<compile_context>
chip_gen: v5e
topology: v5e:2x2
jax: 0.10.0
libtpu: 0.0.40
codegen_flags: <defaults>
</compile_context>

<pallas_src>
import functools

import jax
import jax.numpy as jnp
from jax.experimental import pallas as pl
from jax.experimental.pallas import tpu as pltpu


def _round_up(x, m):
    return (x + m - 1) // m * m


# ------------------------- Pallas matmul kernels --------------------------- #
def _linear_kernel(x_ref, w_ref, b_ref, o_ref, *, relu):
    # bf16 x bf16 -> f32 accumulate on the MXU; bias + ReLU fused in f32.
    y = jnp.dot(x_ref[...], w_ref[...], preferred_element_type=jnp.float32)
    y = y + b_ref[...]
    if relu:
        y = jnp.maximum(y, 0.0)
    o_ref[...] = y.astype(o_ref.dtype)


def linear_pallas(x, w, b, *, relu=False, out_dtype=jnp.float32):
    """y = x @ w + b (optional ReLU).  x:(M,K), w:(K,N), b:(N,).

    Inputs are cast to bf16 at the pallas_call boundary; accumulation, bias
    and ReLU happen in f32 inside the kernel.  N is padded to a lane-dense
    multiple of 128 (a no-op for the conv layers, which are exactly 128).
    """
    M, K = x.shape
    N = w.shape[1]

    Np = _round_up(N, 128)
    if Np != N:
        w = jnp.pad(w, ((0, 0), (0, Np - N)))
        b = jnp.pad(b, ((0, Np - N),))

    # Tile M: one big tile if it fits comfortably, else 512-row tiles.
    if M <= 1024:
        tm = _round_up(M, 8)
    else:
        tm = 512
    Mp = _round_up(M, tm)
    if Mp != M:
        x = jnp.pad(x, ((0, Mp - M), (0, 0)))

    xb = x.astype(jnp.bfloat16)
    wb = w.astype(jnp.bfloat16)
    b2d = b.reshape(1, Np).astype(jnp.float32)

    grid = (Mp // tm,)
    out = pl.pallas_call(
        functools.partial(_linear_kernel, relu=relu),
        out_shape=jax.ShapeDtypeStruct((Mp, Np), out_dtype),
        grid_spec=pltpu.PrefetchScalarGridSpec(
            num_scalar_prefetch=0,
            grid=grid,
            in_specs=[
                pl.BlockSpec((tm, K), lambda i: (i, 0)),   # activation tile
                pl.BlockSpec((K, Np), lambda i: (0, 0)),   # full weight
                pl.BlockSpec((1, Np), lambda i: (0, 0)),   # bias row
            ],
            out_specs=pl.BlockSpec((tm, Np), lambda i: (i, 0)),
        ),
        compiler_params=pltpu.CompilerParams(
            dimension_semantics=("parallel",)),
    )(xb, wb, b2d)

    if Mp != M or Np != N:
        out = out[:M, :N]
    return out


def _fc_fused_kernel(z_ref, w1_ref, b1_ref, w2_ref, b2_ref, o_ref):
    h = jnp.dot(z_ref[...], w1_ref[...], preferred_element_type=jnp.float32)
    h = jnp.maximum(h + b1_ref[...], 0.0)
    h = jnp.dot(h.astype(jnp.bfloat16), w2_ref[...],
                preferred_element_type=jnp.float32)
    h = jnp.maximum(h + b2_ref[...], 0.0)
    o_ref[...] = h.astype(o_ref.dtype)


def fc_fused_pallas(z, w1, b1, w2, b2, *, out_dtype=jnp.bfloat16):
    """relu(relu(z @ w1 + b1) @ w2 + b2) in a single Pallas call."""
    B, K1 = z.shape
    N1 = w1.shape[1]
    N2 = w2.shape[1]
    Bp = _round_up(max(B, 8), 8)          # pad batch to full sublanes
    if Bp != B:
        z = jnp.pad(z, ((0, Bp - B), (0, 0)))

    out = pl.pallas_call(
        _fc_fused_kernel,
        out_shape=jax.ShapeDtypeStruct((Bp, N2), out_dtype),
        grid_spec=pltpu.PrefetchScalarGridSpec(
            num_scalar_prefetch=0,
            grid=(1,),
            in_specs=[
                pl.BlockSpec((Bp, K1), lambda i: (0, 0)),
                pl.BlockSpec((K1, N1), lambda i: (0, 0)),
                pl.BlockSpec((1, N1), lambda i: (0, 0)),
                pl.BlockSpec((N1, N2), lambda i: (0, 0)),
                pl.BlockSpec((1, N2), lambda i: (0, 0)),
            ],
            out_specs=pl.BlockSpec((Bp, N2), lambda i: (0, 0)),
        ),
        compiler_params=pltpu.CompilerParams(
            dimension_semantics=("arbitrary",)),
    )(z.astype(jnp.bfloat16),
      w1.astype(jnp.bfloat16), b1.reshape(1, N1).astype(jnp.float32),
      w2.astype(jnp.bfloat16), b2.reshape(1, N2).astype(jnp.float32))

    return out[:B] if Bp != B else out


# -------------------- ConvTranspose2d (sub-pixel form) ---------------------- #
def _subpixel_weight(w):
    """Build the (9*Cin, 4*Cout) matrix for the sub-pixel decomposition of a
    ConvTranspose2d(Cin, Cout, k=4, s=2, p=1) weight w of shape
    (Cin, Cout, 4, 4) (PyTorch layout).

    Output position (2m+dy, 2n+dx) is a 2x2 conv over the (pad-1) input
    window starting at (m+dy, n+dx) with kernel taps ky = 3+dy-2*r3,
    kx = 3+dx-2*c3; all four sub-pixel groups read from the same 3x3 patch,
    so a single matmul with N = 4*Cout produces the whole output.
    """
    cin, cout = w.shape[0], w.shape[1]
    w_eff = jnp.zeros((3, 3, cin, 2, 2, cout), w.dtype)
    for dy in range(2):
        for dx in range(2):
            for r in range(2):
                for c in range(2):
                    r3, c3 = dy + r, dx + c
                    ky, kx = 3 - dy - 2 * r, 3 - dx - 2 * c
                    w_eff = w_eff.at[r3, c3, :, dy, dx, :].set(w[:, :, ky, kx])
    return w_eff.reshape(9 * cin, 4 * cout)


def conv_transpose2d_nhwc(x, w, b, *, relu, out_dtype=jnp.bfloat16):
    """nn.ConvTranspose2d(Cin, Cout, kernel=4, stride=2, padding=1), NHWC.

    x: (B, H, W, Cin), w: (Cin, Cout, 4, 4) PyTorch layout, b: (Cout,).
    Returns (B, 2H, 2W, Cout).
    """
    B, H, W, Cin = x.shape
    Cout = w.shape[1]

    xp = jnp.pad(x, ((0, 0), (1, 1), (1, 1), (0, 0)))
    # Shared 3x3 patches: (B*H*W, 9*Cin), last axis ordered (r3, c3, ci).
    patches = jnp.concatenate(
        [xp[:, r:r + H, c:c + W, :] for r in range(3) for c in range(3)],
        axis=-1).reshape(B * H * W, 9 * Cin)

    w_eff = _subpixel_weight(w)            # (9*Cin, 4*Cout)
    b_eff = jnp.tile(b, 4)                 # (4*Cout,), index = (dy,dx,co)

    out = linear_pallas(patches, w_eff, b_eff, relu=relu, out_dtype=out_dtype)
    # Pixel shuffle: (B,H,W,dy,dx,Cout) -> (B, 2H, 2W, Cout)
    out = out.reshape(B, H, W, 2, 2, Cout).transpose(0, 1, 3, 2, 4, 5)
    return out.reshape(B, 2 * H, 2 * W, Cout)


# -------------------------------- DecoderA ---------------------------------- #
def decoder_a_forward(zPrivate, zShared, p):
    B = zPrivate.shape[0]
    z = jnp.concatenate([zPrivate, zShared], axis=1)               # (B, 8)

    # Permute fc2 columns so the FC output is already NHWC-flattened
    # (PyTorch's view(B, 32, 4, 4) followed by NCHW->NHWC), layout glue only.
    w2 = p["fc2_w"].reshape(256, 32, 4, 4).transpose(0, 2, 3, 1).reshape(256, 512)
    b2 = p["fc2_b"].reshape(32, 4, 4).transpose(1, 2, 0).reshape(512)

    h = fc_fused_pallas(z, p["fc1_w"], p["fc1_b"], w2, b2)         # (B, 512) bf16
    x = h.reshape(B, 4, 4, 32)                                     # NHWC

    x = conv_transpose2d_nhwc(x, p["ct1_w"], p["ct1_b"], relu=True)   # (B, 8, 8, 32)
    x = conv_transpose2d_nhwc(x, p["ct2_w"], p["ct2_b"], relu=True)   # (B,16,16,32)
    x = conv_transpose2d_nhwc(x, p["ct3_w"], p["ct3_b"], relu=False,
                              out_dtype=jnp.float32)                  # (B,32,32, 1)
    return x.transpose(0, 3, 1, 2)                                 # NCHW (B,1,32,32)


def init_params(key):
    """Deterministic synthetic init: N(0, 0.02) weights, zero biases
    (mirrors normal_init for the Linear layers; conv-transpose weights are
    drawn from the same distribution for determinism).  Linear weights are
    stored as (in, out); ConvTranspose2d weights keep PyTorch (Cin,Cout,4,4)."""
    ks = jax.random.split(key, 5)
    std = 0.02
    zP, zS = 3, 5
    return {
        "fc1_w": std * jax.random.normal(ks[0], (zP + zS, 256), jnp.float32),
        "fc1_b": jnp.zeros((256,), jnp.float32),
        "fc2_w": std * jax.random.normal(ks[1], (256, 32 * 4 * 4), jnp.float32),
        "fc2_b": jnp.zeros((32 * 4 * 4,), jnp.float32),
        "ct1_w": std * jax.random.normal(ks[2], (32, 32, 4, 4), jnp.float32),
        "ct1_b": jnp.zeros((32,), jnp.float32),
        "ct2_w": std * jax.random.normal(ks[3], (32, 32, 4, 4), jnp.float32),
        "ct2_b": jnp.zeros((32,), jnp.float32),
        "ct3_w": std * jax.random.normal(ks[4], (32, 1, 4, 4), jnp.float32),
        "ct3_b": jnp.zeros((1,), jnp.float32),
    }


if __name__ == "__main__":
    key = jax.random.PRNGKey(0)
    kz1, kz2, kp = jax.random.split(key, 3)

    B = 2
    zPrivate = jax.random.normal(kz1, (B, 3), jnp.float32)
    zShared = jax.random.normal(kz2, (B, 5), jnp.float32)
    params = init_params(kp)

    fwd = jax.jit(decoder_a_forward)
    x_recon = fwd(zPrivate, zShared, params)
    x_recon = jax.block_until_ready(x_recon)

    assert x_recon.shape == (B, 1, 32, 32), x_recon.shape
    assert x_recon.dtype == jnp.float32
    assert bool(jnp.all(jnp.isfinite(x_recon)))
    print("KERNEL_OK")
</pallas_src>

<mosaic_0001>
module attributes {stable_mosaic.version = 11 : i64} {
  func.func @_fc_fused_kernel(%arg0: i32, %arg1: memref<8x8xbf16, #tpu.memory_space<vmem>>, %arg2: memref<8x256xbf16, #tpu.memory_space<vmem>>, %arg3: memref<1x256xf32, #tpu.memory_space<vmem>>, %arg4: memref<256x512xbf16, #tpu.memory_space<vmem>>, %arg5: memref<1x512xf32, #tpu.memory_space<vmem>>, %arg6: memref<8x512xbf16, #tpu.memory_space<vmem>>) attributes {dimension_semantics = [#tpu.dimension_semantics<arbitrary>], iteration_bounds = array<i64: 1>, scalar_prefetch = 0 : i64, scratch_operands = 0 : i64, tpu.core_type = #tpu.core_type<tc>, window_params = [{pipeline_mode = #tpu.pipeline_mode<synchronous>, transform_indices = @transform_0, window_bounds = array<i64: 8, 8>}, {pipeline_mode = #tpu.pipeline_mode<synchronous>, transform_indices = @transform_1, window_bounds = array<i64: 8, 256>}, {pipeline_mode = #tpu.pipeline_mode<synchronous>, transform_indices = @transform_2, window_bounds = array<i64: 1, 256>}, {pipeline_mode = #tpu.pipeline_mode<synchronous>, transform_indices = @transform_3, window_bounds = array<i64: 256, 512>}, {pipeline_mode = #tpu.pipeline_mode<synchronous>, transform_indices = @transform_4, window_bounds = array<i64: 1, 512>}, {pipeline_mode = #tpu.pipeline_mode<synchronous>, transform_indices = @transform_5, window_bounds = array<i64: 8, 512>}]} {
    %c0 = arith.constant 0 : index
    %c0_0 = arith.constant 0 : index
    %0 = vector.load %arg1[%c0, %c0_0] : memref<8x8xbf16, #tpu.memory_space<vmem>>, vector<8x8xbf16>
    %c0_1 = arith.constant 0 : index
    %c0_2 = arith.constant 0 : index
    %1 = vector.load %arg2[%c0_1, %c0_2] : memref<8x256xbf16, #tpu.memory_space<vmem>>, vector<8x256xbf16>
    %cst = arith.constant dense<0.000000e+00> : vector<8x256xf32>
    %2 = tpu.matmul %0, %1, %cst {dimension_numbers = #tpu.dot_dimension_numbers<[1], [0], [0], [1], [0, 0, 1, 1], [], []>} : vector<8x8xbf16>, vector<8x256xbf16>, vector<8x256xf32> -> vector<8x256xf32>
    %c0_3 = arith.constant 0 : index
    %c0_4 = arith.constant 0 : index
    %3 = vector.load %arg3[%c0_3, %c0_4] : memref<1x256xf32, #tpu.memory_space<vmem>>, vector<1x256xf32>
    %4 = vector.broadcast %3 : vector<1x256xf32> to vector<8x256xf32>
    %5 = arith.addf %2, %4 : vector<8x256xf32>
    %cst_5 = arith.constant 0.000000e+00 : f32
    %6 = vector.broadcast %cst_5 : f32 to vector<8x256xf32>
    %7 = arith.maximumf %5, %6 : vector<8x256xf32>
    %8 = arith.truncf %7 : vector<8x256xf32> to vector<8x256xbf16>
    %c0_6 = arith.constant 0 : index
    %c0_7 = arith.constant 0 : index
    %9 = vector.load %arg4[%c0_6, %c0_7] : memref<256x512xbf16, #tpu.memory_space<vmem>>, vector<256x512xbf16>
    %cst_8 = arith.constant dense<0.000000e+00> : vector<8x512xf32>
    %10 = tpu.matmul %8, %9, %cst_8 {dimension_numbers = #tpu.dot_dimension_numbers<[1], [0], [0], [1], [0, 0, 1, 1], [], []>} : vector<8x256xbf16>, vector<256x512xbf16>, vector<8x512xf32> -> vector<8x512xf32>
    %c0_9 = arith.constant 0 : index
    %c0_10 = arith.constant 0 : index
    %11 = vector.load %arg5[%c0_9, %c0_10] : memref<1x512xf32, #tpu.memory_space<vmem>>, vector<1x512xf32>
    %12 = vector.broadcast %11 : vector<1x512xf32> to vector<8x512xf32>
    %13 = arith.addf %10, %12 : vector<8x512xf32>
    %cst_11 = arith.constant 0.000000e+00 : f32
    %14 = vector.broadcast %cst_11 : f32 to vector<8x512xf32>
    %15 = arith.maximumf %13, %14 : vector<8x512xf32>
    %16 = arith.truncf %15 : vector<8x512xf32> to vector<8x512xbf16>
    %c0_12 = arith.constant 0 : index
    %c0_13 = arith.constant 0 : index
    %17 = vector.load %arg6[%c0_12, %c0_13] : memref<8x512xbf16, #tpu.memory_space<vmem>>, vector<8x512xbf16>
    tpu.vector_store %arg6[%c0_12, %c0_13], %16 {strides = array<i32>} : memref<8x512xbf16, #tpu.memory_space<vmem>>, vector<8x512xbf16>,
    return
  }
  func.func @transform_0(%arg0: i32) -> (i32, i32) {
    %c0_i32 = arith.constant 0 : i32
    %c0_i32_0 = arith.constant 0 : i32
    %c0_i32_1 = arith.constant 0 : i32
    return %c0_i32, %c0_i32_0 : i32, i32
  }
  func.func @transform_1(%arg0: i32) -> (i32, i32) {
    %c0_i32 = arith.constant 0 : i32
    %c0_i32_0 = arith.constant 0 : i32
    %c0_i32_1 = arith.constant 0 : i32
    return %c0_i32, %c0_i32_0 : i32, i32
  }
  func.func @transform_2(%arg0: i32) -> (i32, i32) {
    %c0_i32 = arith.constant 0 : i32
    %c0_i32_0 = arith.constant 0 : i32
    %c0_i32_1 = arith.constant 0 : i32
    return %c0_i32, %c0_i32_0 : i32, i32
  }
  func.func @transform_3(%arg0: i32) -> (i32, i32) {
    %c0_i32 = arith.constant 0 : i32
    %c0_i32_0 = arith.constant 0 : i32
    %c0_i32_1 = arith.constant 0 : i32
    return %c0_i32, %c0_i32_0 : i32, i32
  }
  func.func @transform_4(%arg0: i32) -> (i32, i32) {
    %c0_i32 = arith.constant 0 : i32
    %c0_i32_0 = arith.constant 0 : i32
    %c0_i32_1 = arith.constant 0 : i32
    return %c0_i32, %c0_i32_0 : i32, i32
  }
  func.func @transform_5(%arg0: i32) -> (i32, i32) {
    %c0_i32 = arith.constant 0 : i32
    %c0_i32_0 = arith.constant 0 : i32
    %c0_i32_1 = arith.constant 0 : i32
    return %c0_i32, %c0_i32_0 : i32, i32
  }
}

module attributes {stable_mosaic.version = 11 : i64} {
  func.func @_linear_kernel(%arg0: i32, %arg1: memref<32x288xbf16, #tpu.memory_space<vmem>>, %arg2: memref<288x128xbf16, #tpu.memory_space<vmem>>, %arg3: memref<1x128xf32, #tpu.memory_space<vmem>>, %arg4: memref<32x128xbf16, #tpu.memory_space<vmem>>) attributes {dimension_semantics = [#tpu.dimension_semantics<parallel>], iteration_bounds = array<i64: 1>, scalar_prefetch = 0 : i64, scratch_operands = 0 : i64, tpu.core_type = #tpu.core_type<tc>, window_params = [{transform_indices = @transform_0, window_bounds = array<i64: 32, 288>}, {pipeline_mode = #tpu.pipeline_mode<synchronous>, transform_indices = @transform_1, window_bounds = array<i64: 288, 128>}, {pipeline_mode = #tpu.pipeline_mode<synchronous>, transform_indices = @transform_2, window_bounds = array<i64: 1, 128>}, {transform_indices = @transform_3, window_bounds = array<i64: 32, 128>}]} {
    %c0 = arith.constant 0 : index
    %c0_0 = arith.constant 0 : index
    %0 = vector.load %arg1[%c0, %c0_0] : memref<32x288xbf16, #tpu.memory_space<vmem>>, vector<32x288xbf16>
    %c0_1 = arith.constant 0 : index
    %c0_2 = arith.constant 0 : index
    %1 = vector.load %arg2[%c0_1, %c0_2] : memref<288x128xbf16, #tpu.memory_space<vmem>>, vector<288x128xbf16>
    %cst = arith.constant dense<0.000000e+00> : vector<32x128xf32>
    %2 = tpu.matmul %0, %1, %cst {dimension_numbers = #tpu.dot_dimension_numbers<[1], [0], [0], [1], [0, 0, 1, 1], [], []>} : vector<32x288xbf16>, vector<288x128xbf16>, vector<32x128xf32> -> vector<32x128xf32>
    %c0_3 = arith.constant 0 : index
    %c0_4 = arith.constant 0 : index
    %3 = vector.load %arg3[%c0_3, %c0_4] : memref<1x128xf32, #tpu.memory_space<vmem>>, vector<1x128xf32>
    %4 = vector.broadcast %3 : vector<1x128xf32> to vector<32x128xf32>
    %5 = arith.addf %2, %4 : vector<32x128xf32>
    %cst_5 = arith.constant 0.000000e+00 : f32
    %6 = vector.broadcast %cst_5 : f32 to vector<32x128xf32>
    %7 = arith.maximumf %5, %6 : vector<32x128xf32>
    %8 = arith.truncf %7 : vector<32x128xf32> to vector<32x128xbf16>
    %c0_6 = arith.constant 0 : index
    %c0_7 = arith.constant 0 : index
    %9 = vector.load %arg4[%c0_6, %c0_7] : memref<32x128xbf16, #tpu.memory_space<vmem>>, vector<32x128xbf16>
    tpu.vector_store %arg4[%c0_6, %c0_7], %8 {strides = array<i32>} : memref<32x128xbf16, #tpu.memory_space<vmem>>, vector<32x128xbf16>,
    return
  }
  func.func @transform_0(%arg0: i32) -> (i32, i32) {
    %c0_i32 = arith.constant 0 : i32
    %c0_i32_0 = arith.constant 0 : i32
    return %arg0, %c0_i32 : i32, i32
  }
  func.func @transform_1(%arg0: i32) -> (i32, i32) {
    %c0_i32 = arith.constant 0 : i32
    %c0_i32_0 = arith.constant 0 : i32
    %c0_i32_1 = arith.constant 0 : i32
    return %c0_i32, %c0_i32_0 : i32, i32
  }
  func.func @transform_2(%arg0: i32) -> (i32, i32) {
    %c0_i32 = arith.constant 0 : i32
    %c0_i32_0 = arith.constant 0 : i32
    %c0_i32_1 = arith.constant 0 : i32
    return %c0_i32, %c0_i32_0 : i32, i32
  }
  func.func @transform_3(%arg0: i32) -> (i32, i32) {
    %c0_i32 = arith.constant 0 : i32
    %c0_i32_0 = arith.constant 0 : i32
    return %arg0, %c0_i32 : i32, i32
  }
}

module attributes {stable_mosaic.version = 11 : i64} {
  func.func @_linear_kernel(%arg0: i32, %arg1: memref<128x288xbf16, #tpu.memory_space<vmem>>, %arg2: memref<288x128xbf16, #tpu.memory_space<vmem>>, %arg3: memref<1x128xf32, #tpu.memory_space<vmem>>, %arg4: memref<128x128xbf16, #tpu.memory_space<vmem>>) attributes {dimension_semantics = [#tpu.dimension_semantics<parallel>], iteration_bounds = array<i64: 1>, scalar_prefetch = 0 : i64, scratch_operands = 0 : i64, tpu.core_type = #tpu.core_type<tc>, window_params = [{transform_indices = @transform_0, window_bounds = array<i64: 128, 288>}, {pipeline_mode = #tpu.pipeline_mode<synchronous>, transform_indices = @transform_1, window_bounds = array<i64: 288, 128>}, {pipeline_mode = #tpu.pipeline_mode<synchronous>, transform_indices = @transform_2, window_bounds = array<i64: 1, 128>}, {transform_indices = @transform_3, window_bounds = array<i64: 128, 128>}]} {
    %c0 = arith.constant 0 : index
    %c0_0 = arith.constant 0 : index
    %0 = vector.load %arg1[%c0, %c0_0] : memref<128x288xbf16, #tpu.memory_space<vmem>>, vector<128x288xbf16>
    %c0_1 = arith.constant 0 : index
    %c0_2 = arith.constant 0 : index
    %1 = vector.load %arg2[%c0_1, %c0_2] : memref<288x128xbf16, #tpu.memory_space<vmem>>, vector<288x128xbf16>
    %cst = arith.constant dense<0.000000e+00> : vector<128x128xf32>
    %2 = tpu.matmul %0, %1, %cst {dimension_numbers = #tpu.dot_dimension_numbers<[1], [0], [0], [1], [0, 0, 1, 1], [], []>} : vector<128x288xbf16>, vector<288x128xbf16>, vector<128x128xf32> -> vector<128x128xf32>
    %c0_3 = arith.constant 0 : index
    %c0_4 = arith.constant 0 : index
    %3 = vector.load %arg3[%c0_3, %c0_4] : memref<1x128xf32, #tpu.memory_space<vmem>>, vector<1x128xf32>
    %4 = vector.broadcast %3 : vector<1x128xf32> to vector<128x128xf32>
    %5 = arith.addf %2, %4 : vector<128x128xf32>
    %cst_5 = arith.constant 0.000000e+00 : f32
    %6 = vector.broadcast %cst_5 : f32 to vector<128x128xf32>
    %7 = arith.maximumf %5, %6 : vector<128x128xf32>
    %8 = arith.truncf %7 : vector<128x128xf32> to vector<128x128xbf16>
    %c0_6 = arith.constant 0 : index
    %c0_7 = arith.constant 0 : index
    %9 = vector.load %arg4[%c0_6, %c0_7] : memref<128x128xbf16, #tpu.memory_space<vmem>>, vector<128x128xbf16>
    tpu.vector_store %arg4[%c0_6, %c0_7], %8 {strides = array<i32>} : memref<128x128xbf16, #tpu.memory_space<vmem>>, vector<128x128xbf16>,
    return
  }
  func.func @transform_0(%arg0: i32) -> (i32, i32) {
    %c0_i32 = arith.constant 0 : i32
    %c0_i32_0 = arith.constant 0 : i32
    return %arg0, %c0_i32 : i32, i32
  }
  func.func @transform_1(%arg0: i32) -> (i32, i32) {
    %c0_i32 = arith.constant 0 : i32
    %c0_i32_0 = arith.constant 0 : i32
    %c0_i32_1 = arith.constant 0 : i32
    return %c0_i32, %c0_i32_0 : i32, i32
  }
  func.func @transform_2(%arg0: i32) -> (i32, i32) {
    %c0_i32 = arith.constant 0 : i32
    %c0_i32_0 = arith.constant 0 : i32
    %c0_i32_1 = arith.constant 0 : i32
    return %c0_i32, %c0_i32_0 : i32, i32
  }
  func.func @transform_3(%arg0: i32) -> (i32, i32) {
    %c0_i32 = arith.constant 0 : i32
    %c0_i32_0 = arith.constant 0 : i32
    return %arg0, %c0_i32 : i32, i32
  }
}

module attributes {stable_mosaic.version = 11 : i64} {
  func.func @_linear_kernel(%arg0: i32, %arg1: memref<512x288xbf16, #tpu.memory_space<vmem>>, %arg2: memref<288x128xbf16, #tpu.memory_space<vmem>>, %arg3: memref<1x128xf32, #tpu.memory_space<vmem>>, %arg4: memref<512x128xf32, #tpu.memory_space<vmem>>) attributes {dimension_semantics = [#tpu.dimension_semantics<parallel>], iteration_bounds = array<i64: 1>, scalar_prefetch = 0 : i64, scratch_operands = 0 : i64, tpu.core_type = #tpu.core_type<tc>, window_params = [{transform_indices = @transform_0, window_bounds = array<i64: 512, 288>}, {pipeline_mode = #tpu.pipeline_mode<synchronous>, transform_indices = @transform_1, window_bounds = array<i64: 288, 128>}, {pipeline_mode = #tpu.pipeline_mode<synchronous>, transform_indices = @transform_2, window_bounds = array<i64: 1, 128>}, {transform_indices = @transform_3, window_bounds = array<i64: 512, 128>}]} {
    %c0 = arith.constant 0 : index
    %c0_0 = arith.constant 0 : index
    %0 = vector.load %arg1[%c0, %c0_0] : memref<512x288xbf16, #tpu.memory_space<vmem>>, vector<512x288xbf16>
    %c0_1 = arith.constant 0 : index
    %c0_2 = arith.constant 0 : index
    %1 = vector.load %arg2[%c0_1, %c0_2] : memref<288x128xbf16, #tpu.memory_space<vmem>>, vector<288x128xbf16>
    %cst = arith.constant dense<0.000000e+00> : vector<512x128xf32>
    %2 = tpu.matmul %0, %1, %cst {dimension_numbers = #tpu.dot_dimension_numbers<[1], [0], [0], [1], [0, 0, 1, 1], [], []>} : vector<512x288xbf16>, vector<288x128xbf16>, vector<512x128xf32> -> vector<512x128xf32>
    %c0_3 = arith.constant 0 : index
    %c0_4 = arith.constant 0 : index
    %3 = vector.load %arg3[%c0_3, %c0_4] : memref<1x128xf32, #tpu.memory_space<vmem>>, vector<1x128xf32>
    %4 = vector.broadcast %3 : vector<1x128xf32> to vector<512x128xf32>
    %5 = arith.addf %2, %4 : vector<512x128xf32>
    %c0_5 = arith.constant 0 : index
    %c0_6 = arith.constant 0 : index
    %6 = vector.load %arg4[%c0_5, %c0_6] : memref<512x128xf32, #tpu.memory_space<vmem>>, vector<512x128xf32>
    tpu.vector_store %arg4[%c0_5, %c0_6], %5 {strides = array<i32>} : memref<512x128xf32, #tpu.memory_space<vmem>>, vector<512x128xf32>,
    return
  }
  func.func @transform_0(%arg0: i32) -> (i32, i32) {
    %c0_i32 = arith.constant 0 : i32
    %c0_i32_0 = arith.constant 0 : i32
    return %arg0, %c0_i32 : i32, i32
  }
  func.func @transform_1(%arg0: i32) -> (i32, i32) {
    %c0_i32 = arith.constant 0 : i32
    %c0_i32_0 = arith.constant 0 : i32
    %c0_i32_1 = arith.constant 0 : i32
    return %c0_i32, %c0_i32_0 : i32, i32
  }
  func.func @transform_2(%arg0: i32) -> (i32, i32) {
    %c0_i32 = arith.constant 0 : i32
    %c0_i32_0 = arith.constant 0 : i32
    %c0_i32_1 = arith.constant 0 : i32
    return %c0_i32, %c0_i32_0 : i32, i32
  }
  func.func @transform_3(%arg0: i32) -> (i32, i32) {
    %c0_i32 = arith.constant 0 : i32
    %c0_i32_0 = arith.constant 0 : i32
    return %arg0, %c0_i32 : i32, i32
  }
}

</mosaic_0001>

<bundles_post_ra>
// kernel: tile.18
= control target key start
LH: loop header
LB: loop body
LE: loop exit
PB: predicated region body
PF: predicated region fallthrough
CT: control target
= control target key end

     0   :  { %s22_s0 = inlined_call_operand.vmem [shape: f32[32], index: 0, kind: input, shape index: {}]   ;;  %s23_s1 = inlined_call_operand.vmem [shape: f32[4,32], index: 1, kind: output, shape index: {}]  }
   0x1   :  { %v4_v0 = vld [vmem:[%s22_s0] ss:$0 sm:$0xff] }
   0x2   :  { %5 = vst [vmem:[%s23_s1] sm:$0xf] %v4_v0 }

// kernel: tile.19
= control target key start
LH: loop header
LB: loop body
LE: loop exit
PB: predicated region body
PF: predicated region fallthrough
CT: control target
= control target key end

     0   :  { %s37_s8 = smov 32   ;;  %s38_s9 = smov 64   ;;  %vm7_vm0 = vcmask 261120   ;;  %vm13_vm1 = vcmask 1048320   ;;  %vm19_vm2 = vcmask 785920   ;;  %vm25_vm3 = vcmask 523520   ;;  %s55_s0 = inlined_call_operand.vmem [shape: f32[4,32], index: 0, kind: input, shape index: {}]   ;;  %s56_s1 = inlined_call_operand.vmem [shape: f32[1,128], index: 1, kind: output, shape index: {}]  }
   0x1   :  { %v4_v0 = vld [vmem:[%s55_s0] sm:$0xf]  ;;  %s36_s0 = smov 96  }
   0x2   :  { %5 = vst [vmem:[#allocation1] sm:$0xf] %v4_v0 }
   0x9   :  { %v10_v1 = vld [vmem:[#allocation1 + $0x3] sm:$0x1]   ;;  %v22_v2 = vld [vmem:[#allocation1 + $0x1] sm:$0x1]   ;;  %v16_v3 = vld [vmem:[#allocation1 + $0x2] sm:$0x1]  }
   0xa   :  { %11 = vrot.lane.b32.xlu0 %v10_v1, %s36_s0  ;;  %23 = vrot.lane.b32.xlu1 %v22_v2, %s37_s8  ;;  %v6_v4 = vld [vmem:[#allocation1] sm:$0x1]  }
   0xb   :  { %8 = vst.msk [vmem:[#allocation0] sm:$0x1] %vm7_vm0, %v6_v4  }
  0x12   :  { %17 = vrot.lane.b32.xlu0 %v16_v3, %s38_s9 }
  0x7c   :  { %v12_v5 = vpop.permute.xlu0 %11   ;;  %v24_v6 = vpop.permute.xlu1 %23  }
  0x7d   :  { %14 = vst.msk [vmem:[#allocation0] sm:$0x1] %vm13_vm1, %v12_v5  }
  0x84   :  { %v18_v7 = vpop.permute.xlu0 %17  }
  0x85   :  { %20 = vst.msk [vmem:[#allocation0] sm:$0x1] %vm19_vm2, %v18_v7  }
  0x86   :  { %26 = vst.msk [vmem:[#allocation0] sm:$0x1] %vm25_vm3, %v24_v6  }
  0x8d   :  { %v29_v8 = vld [vmem:[#allocation0] sm:$0x1] }
  0x8e   :  { %32 = vst [vmem:[%s56_s1] sm:$0x1] %v29_v8 }

// kernel: decoder_a_forward.4
= control target key start
LH: loop header
LB: loop body
LE: loop exit
PB: predicated region body
PF: predicated region fallthrough
CT: control target
= control target key end

     0   :  { %vm38_vm0 = vcmask 1043456   ;;  %vm34_vm1 = vcmask 64512   ;;  %s1343_s1 = inlined_call_operand.vmem [shape: bf16[8,256], index: 1, kind: input, shape index: {}]   ;;  %s1344_s3 = inlined_call_operand.vmem [shape: bf16[256,512], index: 3, kind: input, shape index: {}]   ;;  %s1345_s0 = inlined_call_operand.vmem [shape: bf16[8,8], index: 0, kind: input, shape index: {}]   ;;  %s1346_s2 = inlined_call_operand.vmem [shape: f32[1,256], index: 2, kind: input, shape index: {}]   ;;  %s1347_s4 = inlined_call_operand.vmem [shape: f32[1,512], index: 4, kind: input, shape index: {}]   ;;  %s1348_s5 = inlined_call_operand.vmem [shape: bf16[8,512], index: 5, kind: output, shape index: {}]  }
   0x1   :  { %v22_v0 = vld [vmem:[%s1343_s1] sm:$0xff]  ;;  %v873_v4 = vld [vmem:[%s1344_s3 + $0xec] sm:$0xf0]  ;;  %v703_v10 = vld [vmem:[%s1344_s3 + $0xf0] sm:$0xf0] }
   0x2   :  { %v701_v1 = vld [vmem:[%s1344_s3 + $0xe0] sm:$0xf]  ;;  %v30_v2 = vunpack.c.l.b16 %v22_v0  ;;  %v31_v3 = vunpack.c.h.b16 %v22_v0  ;;  %v905_v6 = vld [vmem:[%s1344_s3 + $0x1ec] sm:$0xf0]  ;;  %v871_v9 = vld [vmem:[%s1344_s3 + $0xe4] sm:$0xf] }
   0x3   :  { %v829_v5 = vld [vmem:[%s1344_s3 + $0x1e0] sm:$0xf]  ;;  %v702_v7 = vor.u32 %v873_v4, %v701_v1  ;;  %v903_v11 = vld [vmem:[%s1344_s3 + $0x1e4] sm:$0xf]  ;;  %v706_v14 = vor.u32 %v871_v9, %v703_v10  ;;  %v831_v15 = vld [vmem:[%s1344_s3 + $0x1f0] sm:$0xf0] }
   0x4   :  { %v830_v8 = vor.u32 %v905_v6, %v829_v5  ;;  %v32_v12 = vpack.c.b16 %v30_v2, %v30_v2  ;;  %v33_v13 = vpack.c.b16 %v31_v3, %v31_v3  ;;  %v685_v16 = vld [vmem:[%s1344_s3 + $0xc0] sm:$0xf]  ;;  %v869_v17 = vld [vmem:[%s1344_s3 + $0xcc] sm:$0xf0]  ;;  %v834_v19 = vor.u32 %v903_v11, %v831_v15  ;;  %v867_v23 = vld [vmem:[%s1344_s3 + $0xc4] sm:$0xf] }
   0x5   :  { %v21_v18 = vld [vmem:[%s1345_s0] sm:$0xf]  ;;  %469 = vmatpush.bf16.msra.mxu2 %v702_v7  ;;  %v686_v20 = vor.u32 %v869_v17, %v685_v16  ;;  %v901_v22 = vld [vmem:[%s1344_s3 + $0x1cc] sm:$0xf0]  ;;  %v687_v27 = vld [vmem:[%s1344_s3 + $0xd0] sm:$0xf0] }
   0x6   :  { %482 = vmatpush.bf16.msra.mxu3 %v830_v8  ;;  %v813_v21 = vld [vmem:[%s1344_s3 + $0x1c0] sm:$0xf]  ;;  %v40_v24 = vsel %vm38_vm0, %v32_v12, 0  ;;  %v43_v25 = vsel %vm38_vm0, %v33_v13, 0  ;;  %v899_v28 = vld [vmem:[%s1344_s3 + $0x1c4] sm:$0xf]  ;;  %v690_v32 = vor.u32 %v867_v23, %v687_v27 }
   0x7   :  { %v814_v26 = vor.u32 %v901_v22, %v813_v21  ;;  %52 = vmatpush.bf16.msra.mxu0 %v40_v24  ;;  %65 = vmatpush.bf16.msra.mxu1 %v43_v25  ;;  %v815_v29 = vld [vmem:[%s1344_s3 + $0x1d0] sm:$0xf0]  ;;  %v669_v30 = vld [vmem:[%s1344_s3 + $0xa0] sm:$0xf]  ;;  %v865_v31 = vld [vmem:[%s1344_s3 + $0xac] sm:$0xf0] }
   0x8   :  { %v818_v33 = vor.u32 %v899_v28, %v815_v29  ;;  %v797_v34 = vld [vmem:[%s1344_s3 + $0x1a0] sm:$0xf]  ;;  %v897_v35 = vld [vmem:[%s1344_s3 + $0x1ac] sm:$0xf0]  ;;  %v863_v36 = vld [vmem:[%s1344_s3 + $0xa4] sm:$0xf]  ;;  %v670_v37 = vor.u32 %v865_v31, %v669_v30 }
   0x9   :  { %470 = vmatpush.bf16.msra.mxu2 %v686_v20  ;;  %v798_v38 = vor.u32 %v897_v35, %v797_v34  ;;  %v671_v39 = vld [vmem:[%s1344_s3 + $0xb0] sm:$0xf0]  ;;  %v895_v40 = vld [vmem:[%s1344_s3 + $0x1a4] sm:$0xf]  ;;  %v653_v42 = vld [vmem:[%s1344_s3 + $0x80] sm:$0xf] }
   0xa   :  { %483 = vmatpush.bf16.msra.mxu3 %v814_v26  ;;  %v799_v41 = vld [vmem:[%s1344_s3 + $0x1b0] sm:$0xf0]  ;;  %585 = vmatmul.msk.bf16.vlgmr.msra.gmra.mxu0 %vm34_vm1, %v21_v18  ;;  %v861_v43 = vld [vmem:[%s1344_s3 + $0x8c] sm:$0xf0]  ;;  %v781_v44 = vld [vmem:[%s1344_s3 + $0x180] sm:$0xf]  ;;  %v674_v46 = vor.u32 %v863_v36, %v671_v39 }
   0xb   :  { %495 = vmatpush.bf16.msrb.mxu0 %v706_v14  ;;  %508 = vmatpush.bf16.msrb.mxu1 %v834_v19  ;;  %v893_v45 = vld [vmem:[%s1344_s3 + $0x18c] sm:$0xf0]  ;;  %v802_v47 = vor.u32 %v895_v40, %v799_v41  ;;  %v859_v48 = vld [vmem:[%s1344_s3 + $0x84] sm:$0xf]  ;;  %v655_v49 = vld [vmem:[%s1344_s3 + $0x90] sm:$0xf0]  ;;  %v654_v50 = vor.u32 %v861_v43, %v653_v42 }
   0xc   :  { %586 = vmatmul.msk.bf16.vlgmr.msra.gmra.mxu1 %vm34_vm1, %v21_v18  ;;  %v782_v51 = vor.u32 %v893_v45, %v781_v44  ;;  %v891_v52 = vld [vmem:[%s1344_s3 + $0x184] sm:$0xf]  ;;  %v783_v53 = vld [vmem:[%s1344_s3 + $0x190] sm:$0xf0]  ;;  %v637_v54 = vld [vmem:[%s1344_s3 + $0x60] sm:$0xf]  ;;  %v658_v58 = vor.u32 %v859_v48, %v655_v49 }
   0xd   :  { %471 = vmatpush.bf16.msra.mxu2 %v670_v37  ;;  %v857_v55 = vld [vmem:[%s1344_s3 + $0x6c] sm:$0xf0]  ;;  %v765_v56 = vld [vmem:[%s1344_s3 + $0x160] sm:$0xf]  ;;  %v786_v59 = vor.u32 %v891_v52, %v783_v53  ;;  %v855_v60 = vld [vmem:[%s1344_s3 + $0x64] sm:$0xf] }
   0xe   :  { %484 = vmatpush.bf16.msra.mxu3 %v798_v38  ;;  %v889_v57 = vld [vmem:[%s1344_s3 + $0x16c] sm:$0xf0]  ;;  %v639_v61 = vld [vmem:[%s1344_s3 + $0x70] sm:$0xf0]  ;;  %v638_v62 = vor.u32 %v857_v55, %v637_v54  ;;  %v887_v0 = vld [vmem:[%s1344_s3 + $0x164] sm:$0xf] }
   0xf   :  { %496 = vmatpush.bf16.msrb.mxu0 %v690_v32  ;;  %509 = vmatpush.bf16.msrb.mxu1 %v818_v33  ;;  %v766_v63 = vor.u32 %v889_v57, %v765_v56  ;;  %v767_v1 = vld [vmem:[%s1344_s3 + $0x170] sm:$0xf0]  ;;  %v621_v2 = vld [vmem:[%s1344_s3 + $0x40] sm:$0xf]  ;;  %v853_v3 = vld [vmem:[%s1344_s3 + $0x4c] sm:$0xf0]  ;;  %v642_v6 = vor.u32 %v855_v60, %v639_v61 }
  0x10   :  { %v749_v4 = vld [vmem:[%s1344_s3 + $0x140] sm:$0xf]  ;;  %v885_v5 = vld [vmem:[%s1344_s3 + $0x14c] sm:$0xf0]  ;;  %v770_v7 = vor.u32 %v887_v0, %v767_v1  ;;  %v851_v8 = vld [vmem:[%s1344_s3 + $0x44] sm:$0xf]  ;;  %v622_v10 = vor.u32 %v853_v3, %v621_v2 }
  0x11   :  { %472 = vmatpush.bf16.msra.mxu2 %v654_v50  ;;  %v623_v9 = vld [vmem:[%s1344_s3 + $0x50] sm:$0xf0]  ;;  %v750_v11 = vor.u32 %v885_v5, %v749_v4  ;;  %v883_v12 = vld [vmem:[%s1344_s3 + $0x144] sm:$0xf]  ;;  %v605_v14 = vld [vmem:[%s1344_s3 + $0x20] sm:$0xf] }
  0x12   :  { %485 = vmatpush.bf16.msra.mxu3 %v782_v51  ;;  %v751_v13 = vld [vmem:[%s1344_s3 + $0x150] sm:$0xf0]  ;;  %v849_v15 = vld [vmem:[%s1344_s3 + $0x2c] sm:$0xf0]  ;;  %v733_v16 = vld [vmem:[%s1344_s3 + $0x120] sm:$0xf]  ;;  %v626_v18 = vor.u32 %v851_v8, %v623_v9 }
  0x13   :  { %497 = vmatpush.bf16.msrb.mxu0 %v674_v46  ;;  %510 = vmatpush.bf16.msrb.mxu1 %v802_v47  ;;  %v881_v17 = vld [vmem:[%s1344_s3 + $0x12c] sm:$0xf0]  ;;  %v754_v19 = vor.u32 %v883_v12, %v751_v13  ;;  %v847_v20 = vld [vmem:[%s1344_s3 + $0x24] sm:$0xf]  ;;  %v607_v21 = vld [vmem:[%s1344_s3 + $0x30] sm:$0xf0]  ;;  %v606_v23 = vor.u32 %v849_v15, %v605_v14 }
  0x14   :  { %v879_v22 = vld [vmem:[%s1344_s3 + $0x124] sm:$0xf]  ;;  %v734_v24 = vor.u32 %v881_v17, %v733_v16  ;;  %v735_v25 = vld [vmem:[%s1344_s3 + $0x130] sm:$0xf0]  ;;  %v589_v26 = vld [vmem:[%s1344_s3] sm:$0xf]  ;;  %v610_v34 = vor.u32 %v847_v20, %v607_v21 }
  0x15   :  { %473 = vmatpush.bf16.msra.mxu2 %v638_v62  ;;  %v845_v27 = vld [vmem:[%s1344_s3 + $0xc] sm:$0xf0]  ;;  %v717_v28 = vld [vmem:[%s1344_s3 + $0x100] sm:$0xf]  ;;  %v709_v30 = vld [vmem:[%s1344_s3 + $0xe8] sm:$0xf]  ;;  %v738_v35 = vor.u32 %v879_v22, %v735_v25 }
  0x16   :  { %486 = vmatpush.bf16.msra.mxu3 %v766_v63  ;;  %v877_v29 = vld [vmem:[%s1344_s3 + $0x10c] sm:$0xf0]  ;;  %v874_v31 = vld [vmem:[%s1344_s3 + $0xf4] sm:$0xf0]  ;;  %v837_v32 = vld [vmem:[%s1344_s3 + $0x1e8] sm:$0xf]  ;;  %v590_v39 = vor.u32 %v845_v27, %v589_v26 }
  0x17   :  { %498 = vmatpush.bf16.msrb.mxu0 %v658_v58  ;;  %511 = vmatpush.bf16.msrb.mxu1 %v786_v59  ;;  %v906_v33 = vld [vmem:[%s1344_s3 + $0x1f4] sm:$0xf0]  ;;  %v843_v36 = vld [vmem:[%s1344_s3 + $0x4] sm:$0xf]  ;;  %v591_v37 = vld [vmem:[%s1344_s3 + $0x10] sm:$0xf0]  ;;  %v718_v40 = vor.u32 %v877_v29, %v717_v28  ;;  %v710_v44 = vor.u32 %v874_v31, %v709_v30 }
  0x18   :  { %v875_v38 = vld [vmem:[%s1344_s3 + $0x104] sm:$0xf]  ;;  %v719_v41 = vld [vmem:[%s1344_s3 + $0x110] sm:$0xf0]  ;;  %v872_v42 = vld [vmem:[%s1344_s3 + $0xec] sm:$0xf]  ;;  %v838_v45 = vor.u32 %v906_v33, %v837_v32  ;;  %v594_v52 = vor.u32 %v843_v36, %v591_v37 }
  0x19   :  { %474 = vmatpush.bf16.msra.mxu2 %v622_v10  ;;  %v711_v43 = vld [vmem:[%s1344_s3 + $0xf8] sm:$0xf0]  ;;  %v904_v46 = vld [vmem:[%s1344_s3 + $0x1ec] sm:$0xf]  ;;  %v693_v48 = vld [vmem:[%s1344_s3 + $0xc8] sm:$0xf]  ;;  %v722_v53 = vor.u32 %v875_v38, %v719_v41 }
  0x1a   :  { %487 = vmatpush.bf16.msra.mxu3 %v750_v11  ;;  %v839_v47 = vld [vmem:[%s1344_s3 + $0x1f8] sm:$0xf0]  ;;  %v870_v49 = vld [vmem:[%s1344_s3 + $0xd4] sm:$0xf0]  ;;  %v821_v50 = vld [vmem:[%s1344_s3 + $0x1c8] sm:$0xf]  ;;  %v714_v54 = vor.u32 %v872_v42, %v711_v43 }
  0x1b   :  { %499 = vmatpush.bf16.msrb.mxu0 %v642_v6  ;;  %512 = vmatpush.bf16.msrb.mxu1 %v770_v7  ;;  %v902_v51 = vld [vmem:[%s1344_s3 + $0x1d4] sm:$0xf0]  ;;  %v842_v55 = vor.u32 %v904_v46, %v839_v47  ;;  %v868_v56 = vld [vmem:[%s1344_s3 + $0xcc] sm:$0xf]  ;;  %v694_v57 = vor.u32 %v870_v49, %v693_v48  ;;  %v695_v59 = vld [vmem:[%s1344_s3 + $0xd8] sm:$0xf0] }
  0x1c   :  { %v822_v58 = vor.u32 %v902_v51, %v821_v50  ;;  %v900_v60 = vld [vmem:[%s1344_s3 + $0x1cc] sm:$0xf]  ;;  %v823_v61 = vld [vmem:[%s1344_s3 + $0x1d8] sm:$0xf0]  ;;  %v698_v62 = vor.u32 %v868_v56, %v695_v59  ;;  %v677_v0 = vld [vmem:[%s1344_s3 + $0xa8] sm:$0xf] }
  0x1d   :  { %475 = vmatpush.bf16.msra.mxu2 %v606_v23  ;;  %v826_v63 = vor.u32 %v900_v60, %v823_v61  ;;  %v866_v1 = vld [vmem:[%s1344_s3 + $0xb4] sm:$0xf0]  ;;  %v805_v2 = vld [vmem:[%s1344_s3 + $0x1a8] sm:$0xf]  ;;  %v864_v5 = vld [vmem:[%s1344_s3 + $0xac] sm:$0xf] }
  0x1e   :  { %488 = vmatpush.bf16.msra.mxu3 %v734_v24  ;;  %v678_v3 = vor.u32 %v866_v1, %v677_v0  ;;  %v898_v4 = vld [vmem:[%s1344_s3 + $0x1b4] sm:$0xf0]  ;;  %v679_v6 = vld [vmem:[%s1344_s3 + $0xb8] sm:$0xf0]  ;;  %v896_v9 = vld [vmem:[%s1344_s3 + $0x1ac] sm:$0xf] }
  0x1f   :  { %500 = vmatpush.bf16.msrb.mxu0 %v626_v18  ;;  %513 = vmatpush.bf16.msrb.mxu1 %v754_v19  ;;  %v806_v7 = vor.u32 %v898_v4, %v805_v2  ;;  %v682_v8 = vor.u32 %v864_v5, %v679_v6  ;;  %v807_v10 = vld [vmem:[%s1344_s3 + $0x1b8] sm:$0xf0]  ;;  %v661_v12 = vld [vmem:[%s1344_s3 + $0x88] sm:$0xf]  ;;  %v862_v13 = vld [vmem:[%s1344_s3 + $0x94] sm:$0xf0] }
  0x20   :  { %v810_v11 = vor.u32 %v896_v9, %v807_v10  ;;  %v789_v14 = vld [vmem:[%s1344_s3 + $0x188] sm:$0xf]  ;;  %v662_v15 = vor.u32 %v862_v13, %v661_v12  ;;  %v894_v16 = vld [vmem:[%s1344_s3 + $0x194] sm:$0xf0]  ;;  %v860_v17 = vld [vmem:[%s1344_s3 + $0x8c] sm:$0xf] }
  0x21   :  { %476 = vmatpush.bf16.msra.mxu2 %v590_v39  ;;  %v663_v18 = vld [vmem:[%s1344_s3 + $0x98] sm:$0xf0]  ;;  %v790_v19 = vor.u32 %v894_v16, %v789_v14  ;;  %v892_v21 = vld [vmem:[%s1344_s3 + $0x18c] sm:$0xf]  ;;  %v645_v24 = vld [vmem:[%s1344_s3 + $0x68] sm:$0xf] }
  0x22   :  { %489 = vmatpush.bf16.msra.mxu3 %v718_v40  ;;  %v666_v20 = vor.u32 %v860_v17, %v663_v18  ;;  %v791_v22 = vld [vmem:[%s1344_s3 + $0x198] sm:$0xf0]  ;;  %v858_v25 = vld [vmem:[%s1344_s3 + $0x74] sm:$0xf0]  ;;  %v773_v26 = vld [vmem:[%s1344_s3 + $0x168] sm:$0xf] }
  0x23   :  { %501 = vmatpush.bf16.msrb.mxu0 %v610_v34  ;;  %514 = vmatpush.bf16.msrb.mxu1 %v738_v35  ;;  %v794_v23 = vor.u32 %v892_v21, %v791_v22  ;;  %v646_v27 = vor.u32 %v858_v25, %v645_v24  ;;  %v890_v28 = vld [vmem:[%s1344_s3 + $0x174] sm:$0xf0]  ;;  %v856_v29 = vld [vmem:[%s1344_s3 + $0x6c] sm:$0xf]  ;;  %v647_v30 = vld [vmem:[%s1344_s3 + $0x78] sm:$0xf0] }
  0x24   :  { %v774_v31 = vor.u32 %v890_v28, %v773_v26  ;;  %v650_v32 = vor.u32 %v856_v29, %v647_v30  ;;  %v888_v33 = vld [vmem:[%s1344_s3 + $0x16c] sm:$0xf]  ;;  %v775_v34 = vld [vmem:[%s1344_s3 + $0x178] sm:$0xf0]  ;;  %v629_v35 = vld [vmem:[%s1344_s3 + $0x48] sm:$0xf] }
  0x25   :  { %521 = vmatpush.bf16.msrb.mxu2 %v710_v44  ;;  %v778_v36 = vor.u32 %v888_v33, %v775_v34  ;;  %v854_v37 = vld [vmem:[%s1344_s3 + $0x54] sm:$0xf0]  ;;  %v757_v38 = vld [vmem:[%s1344_s3 + $0x148] sm:$0xf]  ;;  %v852_v42 = vld [vmem:[%s1344_s3 + $0x4c] sm:$0xf] }
  0x26   :  { %534 = vmatpush.bf16.msrb.mxu3 %v838_v45  ;;  %v886_v39 = vld [vmem:[%s1344_s3 + $0x154] sm:$0xf0]  ;;  %v630_v40 = vor.u32 %v854_v37, %v629_v35  ;;  %v631_v43 = vld [vmem:[%s1344_s3 + $0x58] sm:$0xf0]  ;;  %v884_v44 = vld [vmem:[%s1344_s3 + $0x14c] sm:$0xf] }
  0x27   :  { %502 = vmatpush.bf16.msrb.mxu0 %v594_v52  ;;  %515 = vmatpush.bf16.msrb.mxu1 %v722_v53  ;;  %v758_v41 = vor.u32 %v886_v39, %v757_v38  ;;  %v634_v45 = vor.u32 %v852_v42, %v631_v43  ;;  %v759_v46 = vld [vmem:[%s1344_s3 + $0x158] sm:$0xf0]  ;;  %v613_v47 = vld [vmem:[%s1344_s3 + $0x28] sm:$0xf]  ;;  %v850_v48 = vld [vmem:[%s1344_s3 + $0x34] sm:$0xf0] }
  0x28   :  { %v762_v49 = vor.u32 %v884_v44, %v759_v46  ;;  %v741_v50 = vld [vmem:[%s1344_s3 + $0x128] sm:$0xf]  ;;  %v882_v51 = vld [vmem:[%s1344_s3 + $0x134] sm:$0xf0]  ;;  %v848_v52 = vld [vmem:[%s1344_s3 + $0x2c] sm:$0xf]  ;;  %v614_v53 = vor.u32 %v850_v48, %v613_v47 }
  0x29   :  { %522 = vmatpush.bf16.msrb.mxu2 %v694_v57  ;;  %v743_v56 = vld [vmem:[%s1344_s3 + $0x138] sm:$0xf0]  ;;  %v742_v57 = vor.u32 %v882_v51, %v741_v50  ;;  %v597_v59 = vld [vmem:[%s1344_s3 + $0x8] sm:$0xf]  ;;  %v846_v60 = vld [vmem:[%s1344_s3 + $0x14] sm:$0xf0] }
  0x2a   :  { %535 = vmatpush.bf16.msrb.mxu3 %v822_v58  ;;  %v725_v61 = vld [vmem:[%s1344_s3 + $0x108] sm:$0xf]  ;;  %v844_v0 = vld [vmem:[%s1344_s3 + $0xc] sm:$0xf]  ;;  %v599_v1 = vld [vmem:[%s1344_s3 + $0x18] sm:$0xf0]  ;;  %v598_v4 = vor.u32 %v846_v60, %v597_v59 }
  0x2b   :  { %547 = vmatpush.bf16.msra.mxu0 %v714_v54  ;;  %560 = vmatpush.bf16.msra.mxu1 %v842_v55  ;;  %v615_v54 = vld [vmem:[%s1344_s3 + $0x38] sm:$0xf0]  ;;  %v880_v55 = vld [vmem:[%s1344_s3 + $0x12c] sm:$0xf]  ;;  %v602_v6 = vor.u32 %v844_v0, %v599_v1  ;;  %v139_v21 = vld [vmem:[%s1347_s4] sm:$0xf] }
  0x2c   :  { %v618_v58 = vor.u32 %v848_v52, %v615_v54  ;;  %v876_v2 = vld [vmem:[%s1344_s3 + $0x10c] sm:$0xf]  ;;  %v142_v22 = vperm.slane %v139_v21, 1  ;;  %v141_v26 = vperm.slane %v139_v21, 0  ;;  %v144_v39 = vperm.slane %v139_v21, 3 }
  0x2d   :  { %523 = vmatpush.bf16.msrb.mxu2 %v678_v3  ;;  %v727_v3 = vld [vmem:[%s1344_s3 + $0x118] sm:$0xf0]  ;;  %v143_v43 = vperm.slane %v139_v21, 2 }
  0x2e   :  { %536 = vmatpush.bf16.msrb.mxu3 %v806_v7  ;;  %v730_v7 = vor.u32 %v876_v2, %v727_v3 }
  0x2f   :  { %548 = vmatpush.bf16.msra.mxu0 %v698_v62  ;;  %561 = vmatpush.bf16.msra.mxu1 %v826_v63  ;;  %v746_v62 = vor.u32 %v880_v55, %v743_v56  ;;  %v878_v63 = vld [vmem:[%s1344_s3 + $0x114] sm:$0xf0] }
  0x30   :  { %v726_v5 = vor.u32 %v878_v63, %v725_v61 }
  0x31   :  { %524 = vmatpush.bf16.msrb.mxu2 %v662_v15 }
  0x32   :  { %537 = vmatpush.bf16.msrb.mxu3 %v790_v19 }
  0x33   :  { %549 = vmatpush.bf16.msra.mxu0 %v682_v8  ;;  %562 = vmatpush.bf16.msra.mxu1 %v810_v11  ;;  %v23_v8 = vld [vmem:[%s1346_s2] sm:$0x3] }
  0x34   :  { %v25_v9 = vperm.slane %v23_v8, 0  ;;  %v26_v10 = vperm.slane %v23_v8, 1 }
  0x35   :  { %525 = vmatpush.bf16.msrb.mxu2 %v646_v27 }
  0x36   :  { %538 = vmatpush.bf16.msrb.mxu3 %v774_v31 }
  0x37   :  { %550 = vmatpush.bf16.msra.mxu0 %v666_v20  ;;  %563 = vmatpush.bf16.msra.mxu1 %v794_v23 }
  0x39   :  { %526 = vmatpush.bf16.msrb.mxu2 %v630_v40 }
  0x3a   :  { %539 = vmatpush.bf16.msrb.mxu3 %v758_v41 }
  0x3b   :  { %551 = vmatpush.bf16.msra.mxu0 %v650_v32  ;;  %564 = vmatpush.bf16.msra.mxu1 %v778_v36 }
  0x3d   :  { %527 = vmatpush.bf16.msrb.mxu2 %v614_v53 }
  0x3e   :  { %540 = vmatpush.bf16.msrb.mxu3 %v742_v57 }
  0x3f   :  { %552 = vmatpush.bf16.msra.mxu0 %v634_v45  ;;  %565 = vmatpush.bf16.msra.mxu1 %v762_v49 }
  0x41   :  { %528 = vmatpush.bf16.msrb.mxu2 %v598_v4 }
  0x42   :  { %541 = vmatpush.bf16.msrb.mxu3 %v726_v5 }
  0x43   :  { %553 = vmatpush.bf16.msra.mxu0 %v618_v58  ;;  %566 = vmatpush.bf16.msra.mxu1 %v746_v62 }
  0x47   :  { %554 = vmatpush.bf16.msra.mxu0 %v602_v6  ;;  %567 = vmatpush.bf16.msra.mxu1 %v730_v7 }
  0x87   :  { %v54_v11 = vpop.f32.mrf.mxu0 }
  0x88   :  { %v55_v13 = vadd.f32 %v54_v11, %v25_v9 }
  0x89   :  { %v67_v12 = vpop.f32.mrf.mxu1 }
  0x8a   :  { %v68_v14 = vadd.f32 %v67_v12, %v26_v10  ;;  %v71_v15 = vmax.f32 %v55_v13, 0.0 }
  0x8c   :  { %v72_v16 = vmax.f32 %v68_v14, 0.0  ;;  %v73_v17 = vpack.c.bf16 %v71_v15, %v71_v15 }
  0x8e   :  { %v74_v18 = vpack.c.bf16 %v72_v16, %v72_v16  ;;  %477 = vmatmul.bf16.vlgmr.msra.gmra.mxu2 %v73_v17  ;;  %503 = vmatmul.bf16.vlgmr.msrb.gmra.mxu0 %v73_v17 }
  0x8f   :  { %v56_v19 = vpop.f32.mrf.mxu0 }
  0x90   :  { %490 = vmatmul.bf16.vlgmr.msra.gmra.mxu3 %v74_v18  ;;  %516 = vmatmul.bf16.vlgmr.msrb.gmra.mxu1 %v74_v18 }
  0x91   :  { %v69_v20 = vpop.f32.mrf.mxu1 }
  0x9e   :  { %529 = vmatmul.bf16.vlgmr.msrb.gmra.mxu2 %v73_v17  ;;  %555 = vmatmul.bf16.vlgmr.msra.gmra.mxu0 %v73_v17 }
  0xa0   :  { %542 = vmatmul.bf16.vlgmr.msrb.gmra.mxu3 %v74_v18  ;;  %568 = vmatmul.bf16.vlgmr.msra.gmra.mxu1 %v74_v18 }
 0x10b   :  { %v504_v23 = vpop.f32.mrf.mxu0 }
 0x10c   :  { %v505_v25 = vadd.f32 %v504_v23, %v142_v22 }
 0x10d   :  { %v517_v24 = vpop.f32.mrf.mxu1 }
 0x10e   :  { %v518_v29 = vadd.f32 %v517_v24, %v505_v25 }
 0x110   :  { %v574_v34 = vmax.f32 %v518_v29, 0.0 }
 0x111   :  { %v478_v27 = vpop.f32.mrf.mxu2 }
 0x112   :  { %v479_v30 = vadd.f32 %v478_v27, %v141_v26 }
 0x113   :  { %v491_v28 = vpop.f32.mrf.mxu3  ;;  %v506_v32 = vpop.f32.mrf.mxu0 }
 0x114   :  { %v492_v31 = vadd.f32 %v491_v28, %v479_v30 }
 0x115   :  { %v519_v33 = vpop.f32.mrf.mxu1 }
 0x116   :  { %v573_v35 = vmax.f32 %v492_v31, 0.0 }
 0x118   :  { %v577_v36 = vpack.c.bf16 %v574_v34, %v573_v35 }
 0x119   :  { %v480_v37 = vpop.f32.mrf.mxu2 }
 0x11a   :  { %579 = vst [vmem:[%s1348_s5] sm:$0xff] %v577_v36 }
 0x11b   :  { %v493_v38 = vpop.f32.mrf.mxu3  ;;  %v556_v40 = vpop.f32.mrf.mxu0 }
 0x11c   :  { %v557_v42 = vadd.f32 %v556_v40, %v144_v39 }
 0x11d   :  { %v569_v41 = vpop.f32.mrf.mxu1 }
 0x11e   :  { %v570_v46 = vadd.f32 %v569_v41, %v557_v42 }
 0x120   :  { %v576_v51 = vmax.f32 %v570_v46, 0.0 }
 0x121   :  { %v530_v44 = vpop.f32.mrf.mxu2 }
 0x122   :  { %v531_v47 = vadd.f32 %v530_v44, %v143_v43 }
 0x123   :  { %v543_v45 = vpop.f32.mrf.mxu3  ;;  %v558_v49 = vpop.f32.mrf.mxu0 }
 0x124   :  { %v544_v48 = vadd.f32 %v543_v45, %v531_v47 }
 0x125   :  { %v571_v50 = vpop.f32.mrf.mxu1 }
 0x126   :  { %v575_v52 = vmax.f32 %v544_v48, 0.0 }
 0x128   :  { %v578_v53 = vpack.c.bf16 %v576_v51, %v575_v52 }
 0x129   :  { %v532_v54 = vpop.f32.mrf.mxu2 }
 0x12a   :  { %580 = vst [vmem:[%s1348_s5 + $0x8] sm:$0xff] %v578_v53 }
 0x12b   :  { %v545_v55 = vpop.f32.mrf.mxu3 }

// kernel: decoder_a_forward.5
= control target key start
LH: loop header
LB: loop body
LE: loop exit
PB: predicated region body
PF: predicated region fallthrough
CT: control target
= control target key end

     0   :  { %vm201_vm0 = vcmask 261120   ;;  %s544_s1 = inlined_call_operand.vmem [shape: bf16[288,128], index: 1, kind: input, shape index: {}]   ;;  %s545_s0 = inlined_call_operand.vmem [shape: bf16[32,288], index: 0, kind: input, shape index: {}]   ;;  %s546_s2 = inlined_call_operand.vmem [shape: f32[1,128], index: 2, kind: input, shape index: {}]   ;;  %s547_s3 = inlined_call_operand.vmem [shape: bf16[32,128], index: 3, kind: output, shape index: {}]  }
   0x1   :  { %v392_v0 = vld [vmem:[%s544_s1 + $0x38] sm:$0xff]  ;;  %v391_v2 = vld [vmem:[%s544_s1 + $0x30] sm:$0xff]  ;;  %v402_v3 = vld [vmem:[%s544_s1 + $0x88] sm:$0xff] }
   0x2   :  { %v400_v1 = vld [vmem:[%s544_s1 + $0x78] sm:$0xff]  ;;  %208 = vmatpush.bf16.msra.mxu0 %v392_v0  ;;  %414 = vmatpush.bf16.msra.mxu3 %v392_v0  ;;  %v399_v4 = vld [vmem:[%s544_s1 + $0x70] sm:$0xff]  ;;  %v401_v5 = vld [vmem:[%s544_s1 + $0x80] sm:$0xff] }
   0x3   :  { %227 = vmatpush.bf16.msra.mxu1 %v400_v1  ;;  %252 = vmatpush.bf16.msra.mxu2 %v402_v3  ;;  %v291_v6 = vld [vmem:[%s545_s0 + $0x8] sm:$0xf]  ;;  %v381_v7 = vld [vmem:[%s545_s0 + $0x10] sm:$0xf0]  ;;  %v389_v11 = vld [vmem:[%s544_s1 + $0x20] sm:$0xff] }
   0x4   :  { %v390_v8 = vld [vmem:[%s544_s1 + $0x28] sm:$0xff]  ;;  %v292_v10 = vor.u32 %v381_v7, %v291_v6  ;;  %v397_v12 = vld [vmem:[%s544_s1 + $0x60] sm:$0xff]  ;;  %v388_v13 = vld [vmem:[%s544_s1 + $0x18] sm:$0xff] }
   0x5   :  { %v398_v9 = vld [vmem:[%s544_s1 + $0x68] sm:$0xff]  ;;  %v396_v14 = vld [vmem:[%s544_s1 + $0x58] sm:$0xff]  ;;  %v387_v15 = vld [vmem:[%s544_s1 + $0x10] sm:$0xff] }
   0x6   :  { %209 = vmatpush.bf16.msra.mxu0 %v391_v2  ;;  %415 = vmatpush.bf16.msra.mxu3 %v391_v2  ;;  %v395_v16 = vld [vmem:[%s544_s1 + $0x50] sm:$0xff]  ;;  %v303_v17 = vld [vmem:[%s545_s0 + $0x20] sm:$0xf]  ;;  %v384_v18 = vld [vmem:[%s545_s0 + $0x28] sm:$0xf0] }
   0x7   :  { %228 = vmatpush.bf16.msra.mxu1 %v399_v4  ;;  %253 = vmatpush.bf16.msra.mxu2 %v401_v5  ;;  %v386_v19 = vld [vmem:[%s544_s1 + $0x8] sm:$0xff]  ;;  %v304_v21 = vor.u32 %v384_v18, %v303_v17  ;;  %v385_v22 = vld [vmem:[%s544_s1] sm:$0xff]  ;;  %v295_v25 = vld [vmem:[%s545_s0 + $0x18] sm:$0xf] }
   0x8   :  { %v394_v20 = vld [vmem:[%s544_s1 + $0x48] sm:$0xff]  ;;  %v283_v23 = vld [vmem:[%s545_s0] sm:$0xf]  ;;  %v383_v26 = vld [vmem:[%s545_s0 + $0x20] sm:$0xf0] }
   0x9   :  { %v380_v24 = vld [vmem:[%s545_s0 + $0x8] sm:$0xf0]  ;;  %v393_v27 = vld [vmem:[%s544_s1 + $0x40] sm:$0xff]  ;;  %v285_v29 = vld [vmem:[%s545_s0 + $0xc] sm:$0xf0]  ;;  %v296_v31 = vor.u32 %v383_v26, %v295_v25 }
   0xa   :  { %210 = vmatpush.bf16.msra.mxu0 %v390_v8  ;;  %416 = vmatpush.bf16.msra.mxu3 %v390_v8  ;;  %v379_v28 = vld [vmem:[%s545_s0 + $0x4] sm:$0xf]  ;;  %v284_v30 = vor.u32 %v380_v24, %v283_v23  ;;  %v382_v33 = vld [vmem:[%s545_s0 + $0x1c] sm:$0xf]  ;;  %v297_v34 = vld [vmem:[%s545_s0 + $0x24] sm:$0xf0] }
   0xb   :  { %229 = vmatpush.bf16.msra.mxu1 %v398_v9  ;;  %377 = vmatmul.msk.bf16.vlgmr.msra.gmra.mxu2 %vm201_vm0, %v292_v10  ;;  %v288_v32 = vor.u32 %v379_v28, %v285_v29  ;;  %v300_v35 = vor.u32 %v382_v33, %v297_v34  ;;  %v422_v37 = vld [vmem:[%s546_s2] ss:$0 sm:$0xff] }
   0xe   :  { %211 = vmatpush.bf16.msra.mxu0 %v389_v11  ;;  %417 = vmatpush.bf16.msra.mxu3 %v389_v11 }
   0xf   :  { %230 = vmatpush.bf16.msra.mxu1 %v397_v12 }
  0x12   :  { %212 = vmatpush.bf16.msra.mxu0 %v388_v13  ;;  %418 = vmatpush.bf16.msra.mxu3 %v388_v13 }
  0x13   :  { %231 = vmatpush.bf16.msra.mxu1 %v396_v14 }
  0x16   :  { %213 = vmatpush.bf16.msra.mxu0 %v387_v15  ;;  %419 = vmatpush.bf16.msra.mxu3 %v387_v15 }
  0x17   :  { %232 = vmatpush.bf16.msra.mxu1 %v395_v16 }
  0x1a   :  { %214 = vmatpush.bf16.msra.mxu0 %v386_v19  ;;  %420 = vmatpush.bf16.msra.mxu3 %v386_v19 }
  0x1b   :  { %233 = vmatpush.bf16.msra.mxu1 %v394_v20  ;;  %378 = vmatmul.msk.bf16.gmra.mxu2 %vm201_vm0, %v304_v21 }
  0x1e   :  { %215 = vmatpush.bf16.msra.mxu0 %v385_v22  ;;  %421 = vmatpush.bf16.msra.mxu3 %v385_v22 }
  0x1f   :  { %234 = vmatpush.bf16.msra.mxu1 %v393_v27 }
  0x21   :  { %216 = vmatmul.bf16.vlgmr.msra.gmra.mxu0 %v284_v30  ;;  %221 = vmatmul.bf16.vlgmr.msra.gmra.mxu3 %v296_v31 }
  0x22   :  { %235 = vmatmul.bf16.vlgmr.msra.gmra.mxu1 %v288_v32 }
  0x32   :  { %240 = vmatmul.bf16.gmra.mxu1 %v300_v35 }
  0x8e   :  { %v255_v36 = vpop.f32.mrf.mxu2 }
  0x96   :  { %v257_v42 = vpop.f32.mrf.mxu2 }
  0x9e   :  { %v217_v38 = vpop.f32.mrf.mxu0  ;;  %v260_v53 = vpop.f32.mrf.mxu2 }
  0x9f   :  { %v236_v39 = vpop.f32.mrf.mxu1  ;;  %v218_v40 = vadd.f32 %v422_v37, %v217_v38 }
  0xa1   :  { %v237_v41 = vadd.f32 %v236_v39, %v218_v40 }
  0xa3   :  { %v256_v46 = vadd.f32 %v255_v36, %v237_v41 }
  0xa4   :  { %v222_v47 = vpop.f32.mrf.mxu3 }
  0xa5   :  { %v265_v50 = vmax.f32 %v256_v46, 0.0  ;;  %v223_v55 = vadd.f32 %v422_v37, %v222_v47 }
  0xa6   :  { %v219_v43 = vpop.f32.mrf.mxu0  ;;  %v262_v62 = vpop.f32.mrf.mxu2 }
  0xa7   :  { %v220_v44 = vadd.f32 %v422_v37, %v219_v43  ;;  %v238_v45 = vpop.f32.mrf.mxu1 }
  0xa9   :  { %v239_v48 = vadd.f32 %v238_v45, %v220_v44 }
  0xab   :  { %v258_v49 = vadd.f32 %v257_v42, %v239_v48 }
  0xac   :  { %v224_v56 = vpop.f32.mrf.mxu3 }
  0xad   :  { %v266_v51 = vmax.f32 %v258_v49, 0.0  ;;  %v225_v58 = vadd.f32 %v422_v37, %v224_v56 }
  0xaf   :  { %v406_v52 = vpack.c.bf16 %v266_v51, %v265_v50  ;;  %v241_v54 = vpop.f32.mrf.mxu1 }
  0xb0   :  { %v242_v57 = vadd.f32 %v241_v54, %v223_v55 }
  0xb1   :  { %407 = vst [vmem:[%s547_s3] sm:$0xff] %v406_v52  }
  0xb2   :  { %v261_v60 = vadd.f32 %v260_v53, %v242_v57 }
  0xb4   :  { %v267_v0 = vmax.f32 %v261_v60, 0.0 }
  0xb7   :  { %v243_v59 = vpop.f32.mrf.mxu1 }
  0xb8   :  { %v244_v61 = vadd.f32 %v243_v59, %v225_v58 }
  0xba   :  { %v263_v63 = vadd.f32 %v262_v62, %v244_v61 }
  0xbc   :  { %v268_v1 = vmax.f32 %v263_v63, 0.0 }
  0xbe   :  { %v411_v2 = vpack.c.bf16 %v268_v1, %v267_v0 }
  0xc0   :  { %413 = vst [vmem:[%s547_s3 + $0x8] sm:$0xff] %v411_v2  }

// kernel: decoder_a_forward.6
= control target key start
LH: loop header
LB: loop body
LE: loop exit
PB: predicated region body
PF: predicated region fallthrough
CT: control target
= control target key end

     0   :  { %vm315_vm0 = vcmask 261120   ;;  %s1092_s1 = inlined_call_operand.vmem [shape: bf16[288,128], index: 1, kind: input, shape index: {}]   ;;  %s1093_s0 = inlined_call_operand.vmem [shape: bf16[128,288], index: 0, kind: input, shape index: {}]   ;;  %s1094_s2 = inlined_call_operand.vmem [shape: f32[1,128], index: 2, kind: input, shape index: {}]   ;;  %s1095_s3 = inlined_call_operand.vmem [shape: bf16[128,128], index: 3, kind: output, shape index: {}]  }
   0x1   :  { %v746_v0 = vld [vmem:[%s1092_s1 + $0x38] sm:$0xff]  ;;  %v756_v1 = vld [vmem:[%s1092_s1 + $0x88] sm:$0xff]  ;;  %v745_v3 = vld [vmem:[%s1092_s1 + $0x30] sm:$0xff] }
   0x2   :  { %v754_v2 = vld [vmem:[%s1092_s1 + $0x78] sm:$0xff]  ;;  %340 = vmatpush.bf16.msra.mxu0 %v746_v0  ;;  %804 = vmatpush.bf16.msra.mxu3 %v746_v0  ;;  %v755_v4 = vld [vmem:[%s1092_s1 + $0x80] sm:$0xff]  ;;  %v753_v5 = vld [vmem:[%s1092_s1 + $0x70] sm:$0xff] }
   0x3   :  { %444 = vmatpush.bf16.msra.mxu2 %v756_v1  ;;  %389 = vmatpush.bf16.msra.mxu1 %v754_v2  ;;  %v549_v6 = vld [vmem:[%s1093_s0 + $0x8] sm:$0xf]  ;;  %v717_v7 = vld [vmem:[%s1093_s0 + $0x10] sm:$0xf0]  ;;  %v743_v11 = vld [vmem:[%s1092_s1 + $0x20] sm:$0xff] }
   0x4   :  { %v550_v8 = vor.u32 %v717_v7, %v549_v6  ;;  %v744_v9 = vld [vmem:[%s1092_s1 + $0x28] sm:$0xff]  ;;  %v751_v12 = vld [vmem:[%s1092_s1 + $0x60] sm:$0xff]  ;;  %v742_v13 = vld [vmem:[%s1092_s1 + $0x18] sm:$0xff] }
   0x5   :  { %v752_v10 = vld [vmem:[%s1092_s1 + $0x68] sm:$0xff]  ;;  %v750_v14 = vld [vmem:[%s1092_s1 + $0x58] sm:$0xff]  ;;  %v741_v15 = vld [vmem:[%s1092_s1 + $0x10] sm:$0xff] }
   0x6   :  { %341 = vmatpush.bf16.msra.mxu0 %v745_v3  ;;  %805 = vmatpush.bf16.msra.mxu3 %v745_v3  ;;  %v749_v16 = vld [vmem:[%s1092_s1 + $0x50] sm:$0xff]  ;;  %v561_v17 = vld [vmem:[%s1093_s0 + $0x20] sm:$0xf]  ;;  %v720_v18 = vld [vmem:[%s1093_s0 + $0x28] sm:$0xf0] }
   0x7   :  { %445 = vmatpush.bf16.msra.mxu2 %v755_v4  ;;  %390 = vmatpush.bf16.msra.mxu1 %v753_v5  ;;  %v562_v19 = vor.u32 %v720_v18, %v561_v17  ;;  %v740_v20 = vld [vmem:[%s1092_s1 + $0x8] sm:$0xff]  ;;  %v739_v22 = vld [vmem:[%s1092_s1] sm:$0xff]  ;;  %v613_v26 = vld [vmem:[%s1093_s0 + $0x90] sm:$0xf] }
   0x8   :  { %v748_v21 = vld [vmem:[%s1092_s1 + $0x48] sm:$0xff]  ;;  %v747_v23 = vld [vmem:[%s1092_s1 + $0x40] sm:$0xff]  ;;  %v734_v27 = vld [vmem:[%s1093_s0 + $0x98] sm:$0xf0] }
   0x9   :  { %v541_v24 = vld [vmem:[%s1093_s0] sm:$0xf]  ;;  %v716_v25 = vld [vmem:[%s1093_s0 + $0x8] sm:$0xf0]  ;;  %v715_v28 = vld [vmem:[%s1093_s0 + $0x4] sm:$0xf]  ;;  %v614_v31 = vor.u32 %v734_v27, %v613_v26 }
   0xa   :  { %707 = vmatmul.msk.bf16.vlgmr.msra.gmra.mxu2 %vm315_vm0, %v550_v8  ;;  %342 = vmatpush.bf16.msra.mxu0 %v744_v9  ;;  %v543_v29 = vld [vmem:[%s1093_s0 + $0xc] sm:$0xf0]  ;;  %v542_v30 = vor.u32 %v716_v25, %v541_v24  ;;  %v573_v33 = vld [vmem:[%s1093_s0 + $0x38] sm:$0xf]  ;;  %v723_v34 = vld [vmem:[%s1093_s0 + $0x40] sm:$0xf0] }
   0xb   :  { %806 = vmatpush.bf16.msra.mxu3 %v744_v9  ;;  %391 = vmatpush.bf16.msra.mxu1 %v752_v10  ;;  %v546_v32 = vor.u32 %v715_v28, %v543_v29  ;;  %v574_v35 = vor.u32 %v723_v34, %v573_v33  ;;  %v553_v36 = vld [vmem:[%s1093_s0 + $0x18] sm:$0xf]  ;;  %v719_v37 = vld [vmem:[%s1093_s0 + $0x20] sm:$0xf0]  ;;  %v625_v38 = vld [vmem:[%s1093_s0 + $0xa8] sm:$0xf] }
   0xc   :  { %v737_v39 = vld [vmem:[%s1093_s0 + $0xb0] sm:$0xf0]  ;;  %v718_v40 = vld [vmem:[%s1093_s0 + $0x1c] sm:$0xf]  ;;  %v555_v41 = vld [vmem:[%s1093_s0 + $0x24] sm:$0xf0]  ;;  %v554_v42 = vor.u32 %v719_v37, %v553_v36 }
   0xd   :  { %v626_v43 = vor.u32 %v737_v39, %v625_v38  ;;  %v558_v44 = vor.u32 %v718_v40, %v555_v41  ;;  %v585_v45 = vld [vmem:[%s1093_s0 + $0x50] sm:$0xf]  ;;  %v726_v46 = vld [vmem:[%s1093_s0 + $0x58] sm:$0xf0]  ;;  %v733_v50 = vld [vmem:[%s1093_s0 + $0x94] sm:$0xf] }
   0xe   :  { %343 = vmatpush.bf16.msra.mxu0 %v743_v11  ;;  %v586_v47 = vor.u32 %v726_v46, %v585_v45  ;;  %v565_v48 = vld [vmem:[%s1093_s0 + $0x30] sm:$0xf]  ;;  %v722_v49 = vld [vmem:[%s1093_s0 + $0x38] sm:$0xf0]  ;;  %v615_v51 = vld [vmem:[%s1093_s0 + $0x9c] sm:$0xf0] }
   0xf   :  { %807 = vmatpush.bf16.msra.mxu3 %v743_v11  ;;  %392 = vmatpush.bf16.msra.mxu1 %v751_v12  ;;  %v721_v52 = vld [vmem:[%s1093_s0 + $0x34] sm:$0xf]  ;;  %v567_v53 = vld [vmem:[%s1093_s0 + $0x3c] sm:$0xf0]  ;;  %v566_v54 = vor.u32 %v722_v49, %v565_v48  ;;  %v618_v55 = vor.u32 %v733_v50, %v615_v51  ;;  %v597_v57 = vld [vmem:[%s1093_s0 + $0x68] sm:$0xf] }
  0x10   :  { %v570_v56 = vor.u32 %v721_v52, %v567_v53  ;;  %v729_v58 = vld [vmem:[%s1093_s0 + $0x70] sm:$0xf0]  ;;  %v577_v60 = vld [vmem:[%s1093_s0 + $0x48] sm:$0xf]  ;;  %v736_v62 = vld [vmem:[%s1093_s0 + $0xac] sm:$0xf] }
  0x11   :  { %v598_v59 = vor.u32 %v729_v58, %v597_v57  ;;  %v725_v61 = vld [vmem:[%s1093_s0 + $0x50] sm:$0xf0]  ;;  %v627_v63 = vld [vmem:[%s1093_s0 + $0xb4] sm:$0xf0]  ;;  %v724_v0 = vld [vmem:[%s1093_s0 + $0x4c] sm:$0xf] }
  0x12   :  { %344 = vmatpush.bf16.msra.mxu0 %v742_v13  ;;  %v579_v1 = vld [vmem:[%s1093_s0 + $0x54] sm:$0xf0]  ;;  %v630_v3 = vor.u32 %v736_v62, %v627_v63  ;;  %v732_v6 = vld [vmem:[%s1093_s0 + $0x88] sm:$0xf0]  ;;  %v589_v8 = vld [vmem:[%s1093_s0 + $0x60] sm:$0xf] }
  0x13   :  { %808 = vmatpush.bf16.msra.mxu3 %v742_v13  ;;  %393 = vmatpush.bf16.msra.mxu1 %v750_v14  ;;  %v582_v4 = vor.u32 %v724_v0, %v579_v1  ;;  %v728_v9 = vld [vmem:[%s1093_s0 + $0x68] sm:$0xf0]  ;;  %v591_v11 = vld [vmem:[%s1093_s0 + $0x6c] sm:$0xf0]  ;;  %v601_v17 = vld [vmem:[%s1093_s0 + $0x78] sm:$0xf] }
  0x14   :  { %v731_v18 = vld [vmem:[%s1093_s0 + $0x80] sm:$0xf0]  ;;  %v738_v24 = vld [vmem:[%s1093_s0 + $0xb8] sm:$0xf0]  ;;  %v1050_v29 = vld [vmem:[%s1094_s2] ss:$0 sm:$0xff] }
  0x16   :  { %345 = vmatpush.bf16.msra.mxu0 %v741_v15 }
  0x17   :  { %809 = vmatpush.bf16.msra.mxu3 %v741_v15  ;;  %394 = vmatpush.bf16.msra.mxu1 %v749_v16  ;;  %v735_v15 = vld [vmem:[%s1093_s0 + $0xa0] sm:$0xf0] }
  0x1a   :  { %708 = vmatmul.msk.bf16.gmra.mxu2 %vm315_vm0, %v562_v19  ;;  %346 = vmatpush.bf16.msra.mxu0 %v740_v20  ;;  %v730_v19 = vld [vmem:[%s1093_s0 + $0x7c] sm:$0xf] }
  0x1b   :  { %810 = vmatpush.bf16.msra.mxu3 %v740_v20  ;;  %395 = vmatpush.bf16.msra.mxu1 %v748_v21  ;;  %v603_v20 = vld [vmem:[%s1093_s0 + $0x84] sm:$0xf0] }
  0x1e   :  { %347 = vmatpush.bf16.msra.mxu0 %v739_v22 }
  0x1f   :  { %811 = vmatpush.bf16.msra.mxu3 %v739_v22  ;;  %396 = vmatpush.bf16.msra.mxu1 %v747_v23  ;;  %v606_v22 = vor.u32 %v730_v19, %v603_v20 }
  0x21   :  { %348 = vmatmul.bf16.vlgmr.msra.gmra.mxu0 %v542_v30 }
  0x22   :  { %378 = vmatmul.bf16.vlgmr.msra.gmra.mxu3 %v614_v31  ;;  %397 = vmatmul.bf16.vlgmr.msra.gmra.mxu1 %v546_v32 }
  0x23   :  { %812 = vmatpush.bf16.msrb.mxu3 %v754_v2  ;;  %v578_v2 = vor.u32 %v725_v61, %v577_v60 }
  0x27   :  { %813 = vmatpush.bf16.msrb.mxu3 %v753_v5  ;;  %v609_v5 = vld [vmem:[%s1093_s0 + $0x80] sm:$0xf] }
  0x28   :  { %v610_v7 = vor.u32 %v732_v6, %v609_v5 }
  0x2a   :  { %709 = vmatmul.msk.bf16.gmra.mxu2 %vm315_vm0, %v574_v35 }
  0x2b   :  { %814 = vmatpush.bf16.msrb.mxu3 %v752_v10  ;;  %v727_v10 = vld [vmem:[%s1093_s0 + $0x64] sm:$0xf] }
  0x2c   :  { %v594_v13 = vor.u32 %v727_v10, %v591_v11 }
  0x2f   :  { %815 = vmatpush.bf16.msrb.mxu3 %v751_v12  ;;  %v590_v12 = vor.u32 %v728_v9, %v589_v8 }
  0x31   :  { %353 = vmatmul.bf16.gmra.mxu0 %v554_v42 }
  0x32   :  { %383 = vmatmul.bf16.gmra.mxu3 %v626_v43  ;;  %402 = vmatmul.bf16.gmra.mxu1 %v558_v44 }
  0x33   :  { %816 = vmatpush.bf16.msrb.mxu3 %v750_v14  ;;  %v621_v14 = vld [vmem:[%s1093_s0 + $0x98] sm:$0xf] }
  0x37   :  { %817 = vmatpush.bf16.msrb.mxu3 %v749_v16  ;;  %v622_v16 = vor.u32 %v735_v15, %v621_v14 }
  0x3a   :  { %710 = vmatmul.msk.bf16.gmra.mxu2 %vm315_vm0, %v586_v47 }
  0x3b   :  { %818 = vmatpush.bf16.msrb.mxu3 %v748_v21  ;;  %v602_v21 = vor.u32 %v731_v18, %v601_v17 }
  0x3f   :  { %819 = vmatpush.bf16.msrb.mxu3 %v747_v23  ;;  %v633_v23 = vld [vmem:[%s1093_s0 + $0xb0] sm:$0xf] }
  0x40   :  { %v634_v25 = vor.u32 %v738_v24, %v633_v23 }
  0x41   :  { %358 = vmatmul.bf16.gmra.mxu0 %v566_v54 }
  0x42   :  { %427 = vmatmul.bf16.vlgmr.msrb.gmra.mxu3 %v618_v55  ;;  %407 = vmatmul.bf16.gmra.mxu1 %v570_v56 }
  0x4a   :  { %711 = vmatmul.msk.bf16.gmra.mxu2 %vm315_vm0, %v598_v59 }
  0x51   :  { %363 = vmatmul.bf16.gmra.mxu0 %v578_v2 }
  0x52   :  { %432 = vmatmul.bf16.gmra.mxu3 %v630_v3  ;;  %412 = vmatmul.bf16.gmra.mxu1 %v582_v4 }
  0x5a   :  { %712 = vmatmul.msk.bf16.gmra.mxu2 %vm315_vm0, %v610_v7 }
  0x61   :  { %368 = vmatmul.bf16.gmra.mxu0 %v590_v12 }
  0x62   :  { %417 = vmatmul.bf16.gmra.mxu1 %v594_v13 }
  0x6a   :  { %713 = vmatmul.msk.bf16.gmra.mxu2 %vm315_vm0, %v622_v16 }
  0x71   :  { %373 = vmatmul.bf16.gmra.mxu0 %v602_v21 }
  0x72   :  { %422 = vmatmul.bf16.gmra.mxu1 %v606_v22 }
  0x7a   :  { %714 = vmatmul.msk.bf16.gmra.mxu2 %vm315_vm0, %v634_v25 }
  0x8d   :  { %v447_v26 = vpop.f32.mrf.mxu2 }
  0x95   :  { %v449_v27 = vpop.f32.mrf.mxu2 }
  0x9d   :  { %v452_v28 = vpop.f32.mrf.mxu2 }
  0x9e   :  { %v349_v30 = vpop.f32.mrf.mxu0 }
  0x9f   :  { %v398_v31 = vpop.f32.mrf.mxu1  ;;  %v350_v32 = vadd.f32 %v1050_v29, %v349_v30 }
  0xa1   :  { %v399_v33 = vadd.f32 %v398_v31, %v350_v32 }
  0xa3   :  { %v448_v38 = vadd.f32 %v447_v26, %v399_v33 }
  0xa5   :  { %v454_v34 = vpop.f32.mrf.mxu2  ;;  %v487_v41 = vmax.f32 %v448_v38, 0.0  ;;  %v379_v55 = vpop.f32.mrf.mxu3 }
  0xa6   :  { %v351_v35 = vpop.f32.mrf.mxu0 }
  0xa7   :  { %v352_v36 = vadd.f32 %v1050_v29, %v351_v35  ;;  %v400_v37 = vpop.f32.mrf.mxu1 }
  0xa9   :  { %v401_v39 = vadd.f32 %v400_v37, %v352_v36 }
  0xab   :  { %v450_v40 = vadd.f32 %v449_v27, %v401_v39 }
  0xad   :  { %v488_v42 = vmax.f32 %v450_v40, 0.0  ;;  %v457_v43 = vpop.f32.mrf.mxu2  ;;  %v381_v0 = vpop.f32.mrf.mxu3 }
  0xae   :  { %v354_v44 = vpop.f32.mrf.mxu0 }
  0xaf   :  { %v760_v45 = vpack.c.bf16 %v488_v42, %v487_v41  ;;  %v403_v46 = vpop.f32.mrf.mxu1  ;;  %v355_v47 = vadd.f32 %v1050_v29, %v354_v44 }
  0xb1   :  { %761 = vst [vmem:[%s1095_s3] sm:$0xff] %v760_v45   ;;  %v404_v48 = vadd.f32 %v403_v46, %v355_v47  ;;  %v380_v47 = vadd.f32 %v1050_v29, %v379_v55 }
  0xb3   :  { %v453_v53 = vadd.f32 %v452_v28, %v404_v48 }
  0xb5   :  { %v459_v49 = vpop.f32.mrf.mxu2  ;;  %v489_v57 = vmax.f32 %v453_v53, 0.0  ;;  %v384_v13 = vpop.f32.mrf.mxu3 }
  0xb6   :  { %v356_v50 = vpop.f32.mrf.mxu0 }
  0xb7   :  { %v357_v51 = vadd.f32 %v1050_v29, %v356_v50  ;;  %v405_v52 = vpop.f32.mrf.mxu1 }
  0xb9   :  { %v406_v54 = vadd.f32 %v405_v52, %v357_v51  ;;  %v382_v51 = vadd.f32 %v1050_v29, %v381_v0 }
  0xbb   :  { %v455_v56 = vadd.f32 %v454_v34, %v406_v54 }
  0xbd   :  { %v490_v58 = vmax.f32 %v455_v56, 0.0  ;;  %v462_v59 = vpop.f32.mrf.mxu2  ;;  %v386_v22 = vpop.f32.mrf.mxu3 }
  0xbe   :  { %v359_v60 = vpop.f32.mrf.mxu0 }
  0xbf   :  { %v765_v61 = vpack.c.bf16 %v490_v58, %v489_v57  ;;  %v408_v62 = vpop.f32.mrf.mxu1  ;;  %v360_v63 = vadd.f32 %v1050_v29, %v359_v60 }
  0xc1   :  { %797 = vst [vmem:[%s1095_s3 + $0x8] sm:$0xff] %v765_v61   ;;  %v409_v1 = vadd.f32 %v408_v62, %v360_v63 }
  0xc3   :  { %v458_v6 = vadd.f32 %v457_v43, %v409_v1 }
  0xc5   :  { %v464_v2 = vpop.f32.mrf.mxu2  ;;  %v491_v9 = vmax.f32 %v458_v6, 0.0  ;;  %v428_v34 = vpop.f32.mrf.mxu3 }
  0xc6   :  { %v361_v3 = vpop.f32.mrf.mxu0  ;;  %v429_v53 = vadd.f32 %v428_v34, %v380_v47 }
  0xc7   :  { %v362_v4 = vadd.f32 %v1050_v29, %v361_v3  ;;  %v410_v5 = vpop.f32.mrf.mxu1 }
  0xc9   :  { %v411_v7 = vadd.f32 %v410_v5, %v362_v4 }
  0xcb   :  { %v460_v8 = vadd.f32 %v459_v49, %v411_v7 }
  0xcd   :  { %v492_v10 = vmax.f32 %v460_v8, 0.0  ;;  %v467_v11 = vpop.f32.mrf.mxu2  ;;  %v430_v43 = vpop.f32.mrf.mxu3  ;;  %v385_v8 = vadd.f32 %v1050_v29, %v384_v13 }
  0xce   :  { %v364_v12 = vpop.f32.mrf.mxu0  ;;  %v431_v54 = vadd.f32 %v430_v43, %v382_v51 }
  0xcf   :  { %v770_v14 = vpack.c.bf16 %v492_v10, %v491_v9  ;;  %v413_v15 = vpop.f32.mrf.mxu1  ;;  %v365_v16 = vadd.f32 %v1050_v29, %v364_v12  ;;  %v387_v10 = vadd.f32 %v1050_v29, %v386_v22 }
  0xd1   :  { %798 = vst [vmem:[%s1095_s3 + $0x10] sm:$0xff] %v770_v14   ;;  %v414_v17 = vadd.f32 %v413_v15, %v365_v16 }
  0xd3   :  { %v463_v23 = vadd.f32 %v462_v59, %v414_v17 }
  0xd5   :  { %v469_v18 = vpop.f32.mrf.mxu2  ;;  %v493_v26 = vmax.f32 %v463_v23, 0.0  ;;  %v433_v61 = vpop.f32.mrf.mxu3 }
  0xd6   :  { %v366_v19 = vpop.f32.mrf.mxu0  ;;  %v434_v12 = vadd.f32 %v433_v61, %v385_v8 }
  0xd7   :  { %v367_v20 = vadd.f32 %v1050_v29, %v366_v19  ;;  %v415_v21 = vpop.f32.mrf.mxu1 }
  0xd9   :  { %v416_v24 = vadd.f32 %v415_v21, %v367_v20 }
  0xdb   :  { %v465_v25 = vadd.f32 %v464_v2, %v416_v24 }
  0xdd   :  { %v494_v27 = vmax.f32 %v465_v25, 0.0  ;;  %v472_v28 = vpop.f32.mrf.mxu2 }
  0xde   :  { %v369_v30 = vpop.f32.mrf.mxu0 }
  0xdf   :  { %v775_v31 = vpack.c.bf16 %v494_v27, %v493_v26  ;;  %v418_v32 = vpop.f32.mrf.mxu1  ;;  %v370_v33 = vadd.f32 %v1050_v29, %v369_v30 }
  0xe1   :  { %799 = vst [vmem:[%s1095_s3 + $0x18] sm:$0xff] %v775_v31   ;;  %v419_v35 = vadd.f32 %v418_v32, %v370_v33 }
  0xe3   :  { %v468_v40 = vadd.f32 %v467_v11, %v419_v35  ;;  %v435_v11 = vpop.f32.mrf.mxu3 }
  0xe4   :  { %v436_v14 = vadd.f32 %v435_v11, %v387_v10 }
  0xe5   :  { %v474_v36 = vpop.f32.mrf.mxu2  ;;  %v495_v44 = vmax.f32 %v468_v40, 0.0 }
  0xe6   :  { %v371_v37 = vpop.f32.mrf.mxu0 }
  0xe7   :  { %v372_v38 = vadd.f32 %v1050_v29, %v371_v37  ;;  %v420_v39 = vpop.f32.mrf.mxu1 }
  0xe9   :  { %v421_v41 = vadd.f32 %v420_v39, %v372_v38 }
  0xeb   :  { %v470_v42 = vadd.f32 %v469_v18, %v421_v41 }
  0xed   :  { %v496_v45 = vmax.f32 %v470_v42, 0.0  ;;  %v477_v46 = vpop.f32.mrf.mxu2 }
  0xee   :  { %v374_v48 = vpop.f32.mrf.mxu0  ;;  %v478_v56 = vadd.f32 %v477_v46, %v429_v53 }
  0xef   :  { %v780_v49 = vpack.c.bf16 %v496_v45, %v495_v44  ;;  %v423_v50 = vpop.f32.mrf.mxu1  ;;  %v375_v52 = vadd.f32 %v1050_v29, %v374_v48 }
  0xf0   :  { %v499_v63 = vmax.f32 %v478_v56, 0.0 }
  0xf1   :  { %800 = vst [vmem:[%s1095_s3 + $0x20] sm:$0xff] %v780_v49   ;;  %v424_v57 = vadd.f32 %v423_v50, %v375_v52 }
  0xf3   :  { %v473_v0 = vadd.f32 %v472_v28, %v424_v57 }
  0xf5   :  { %v479_v58 = vpop.f32.mrf.mxu2  ;;  %v497_v5 = vmax.f32 %v473_v0, 0.0 }
  0xf6   :  { %v480_v59 = vadd.f32 %v479_v58, %v431_v54  ;;  %v376_v60 = vpop.f32.mrf.mxu0 }
  0xf7   :  { %v377_v55 = vadd.f32 %v1050_v29, %v376_v60  ;;  %v425_v62 = vpop.f32.mrf.mxu1 }
  0xf8   :  { %v500_v1 = vmax.f32 %v480_v59, 0.0 }
  0xf9   :  { %v426_v2 = vadd.f32 %v425_v62, %v377_v55 }
  0xfa   :  { %v790_v3 = vpack.c.bf16 %v500_v1, %v499_v63 }
  0xfb   :  { %v475_v4 = vadd.f32 %v474_v36, %v426_v2 }
  0xfc   :  { %802 = vst [vmem:[%s1095_s3 + $0x30] sm:$0xff] %v790_v3  }
  0xfd   :  { %v498_v6 = vmax.f32 %v475_v4, 0.0  ;;  %v482_v7 = vpop.f32.mrf.mxu2 }
  0xfe   :  { %v483_v15 = vadd.f32 %v482_v7, %v434_v12 }
  0xff   :  { %v785_v9 = vpack.c.bf16 %v498_v6, %v497_v5 }
 0x100   :  { %v501_v18 = vmax.f32 %v483_v15, 0.0 }
 0x101   :  { %801 = vst [vmem:[%s1095_s3 + $0x28] sm:$0xff] %v785_v9  }
 0x105   :  { %v484_v16 = vpop.f32.mrf.mxu2 }
 0x106   :  { %v485_v17 = vadd.f32 %v484_v16, %v436_v14 }
 0x108   :  { %v502_v19 = vmax.f32 %v485_v17, 0.0 }
 0x10a   :  { %v795_v20 = vpack.c.bf16 %v502_v19, %v501_v18 }
 0x10c   :  { %803 = vst [vmem:[%s1095_s3 + $0x38] sm:$0xff] %v795_v20  }

// kernel: decoder_a_forward.7
= control target key start
LH: loop header
LB: loop body
LE: loop exit
PB: predicated region body
PF: predicated region fallthrough
CT: control target
= control target key end

     0   :  { %vm771_vm0 = vcmask 261120   ;;  %s3117_s1 = inlined_call_operand.vmem [shape: bf16[288,128], index: 1, kind: input, shape index: {}]   ;;  %s3118_s0 = inlined_call_operand.vmem [shape: bf16[512,288], index: 0, kind: input, shape index: {}]   ;;  %s3119_s2 = inlined_call_operand.vmem [shape: f32[1,128], index: 2, kind: input, shape index: {}]   ;;  %s3120_s3 = inlined_call_operand.vmem [shape: f32[512,128], index: 3, kind: output, shape index: {}]  }
   0x1   :  { %v2034_v0 = vld [vmem:[%s3117_s1 + $0x38] sm:$0xff]  ;;  %v2091_v1 = vld [vmem:[%s3117_s1 + $0x88] sm:$0xff]  ;;  %v2033_v3 = vld [vmem:[%s3117_s1 + $0x30] sm:$0xff] }
   0x2   :  { %v2042_v2 = vld [vmem:[%s3117_s1 + $0x78] sm:$0xff]  ;;  %868 = vmatpush.bf16.msra.mxu0 %v2034_v0  ;;  %2045 = vmatpush.bf16.msra.mxu3 %v2034_v0  ;;  %v2102_v4 = vld [vmem:[%s3117_s1 + $0x80] sm:$0xff]  ;;  %v2041_v5 = vld [vmem:[%s3117_s1 + $0x70] sm:$0xff] }
   0x3   :  { %1212 = vmatpush.bf16.msra.mxu2 %v2091_v1  ;;  %1037 = vmatpush.bf16.msra.mxu1 %v2042_v2  ;;  %v1453_v6 = vld [vmem:[%s3118_s0 + $0x8] sm:$0xf]  ;;  %v1933_v7 = vld [vmem:[%s3118_s0 + $0x10] sm:$0xf0]  ;;  %v2031_v11 = vld [vmem:[%s3117_s1 + $0x20] sm:$0xff] }
   0x4   :  { %v1454_v8 = vor.u32 %v1933_v7, %v1453_v6  ;;  %v2032_v9 = vld [vmem:[%s3117_s1 + $0x28] sm:$0xff]  ;;  %v2039_v12 = vld [vmem:[%s3117_s1 + $0x60] sm:$0xff]  ;;  %v2030_v13 = vld [vmem:[%s3117_s1 + $0x18] sm:$0xff] }
   0x5   :  { %v2040_v10 = vld [vmem:[%s3117_s1 + $0x68] sm:$0xff]  ;;  %v2038_v14 = vld [vmem:[%s3117_s1 + $0x58] sm:$0xff]  ;;  %v2029_v15 = vld [vmem:[%s3117_s1 + $0x10] sm:$0xff] }
   0x6   :  { %869 = vmatpush.bf16.msra.mxu0 %v2033_v3  ;;  %2046 = vmatpush.bf16.msra.mxu3 %v2033_v3  ;;  %v2037_v16 = vld [vmem:[%s3117_s1 + $0x50] sm:$0xff]  ;;  %v1465_v17 = vld [vmem:[%s3118_s0 + $0x20] sm:$0xf]  ;;  %v1936_v18 = vld [vmem:[%s3118_s0 + $0x28] sm:$0xf0] }
   0x7   :  { %1213 = vmatpush.bf16.msra.mxu2 %v2102_v4  ;;  %1038 = vmatpush.bf16.msra.mxu1 %v2041_v5  ;;  %v1466_v19 = vor.u32 %v1936_v18, %v1465_v17  ;;  %v2028_v20 = vld [vmem:[%s3117_s1 + $0x8] sm:$0xff]  ;;  %v2027_v22 = vld [vmem:[%s3117_s1] sm:$0xff]  ;;  %v1447_v29 = vld [vmem:[%s3118_s0 + $0xc] sm:$0xf0] }
   0x8   :  { %v2036_v21 = vld [vmem:[%s3117_s1 + $0x48] sm:$0xff]  ;;  %v2035_v23 = vld [vmem:[%s3117_s1 + $0x40] sm:$0xff]  ;;  %v1477_v33 = vld [vmem:[%s3118_s0 + $0x38] sm:$0xf] }
   0x9   :  { %v1445_v24 = vld [vmem:[%s3118_s0] sm:$0xf]  ;;  %v1932_v25 = vld [vmem:[%s3118_s0 + $0x8] sm:$0xf0]  ;;  %v1931_v28 = vld [vmem:[%s3118_s0 + $0x4] sm:$0xf] }
   0xa   :  { %1899 = vmatmul.msk.bf16.vlgmr.msra.gmra.mxu2 %vm771_vm0, %v1454_v8  ;;  %870 = vmatpush.bf16.msra.mxu0 %v2032_v9  ;;  %v1733_v26 = vld [vmem:[%s3118_s0 + $0x240] sm:$0xf]  ;;  %v2004_v27 = vld [vmem:[%s3118_s0 + $0x248] sm:$0xf0]  ;;  %v1446_v30 = vor.u32 %v1932_v25, %v1445_v24  ;;  %v1450_v32 = vor.u32 %v1931_v28, %v1447_v29  ;;  %v1939_v34 = vld [vmem:[%s3118_s0 + $0x40] sm:$0xf0] }
   0xb   :  { %2047 = vmatpush.bf16.msra.mxu3 %v2032_v9  ;;  %1039 = vmatpush.bf16.msra.mxu1 %v2040_v10  ;;  %v1734_v31 = vor.u32 %v2004_v27, %v1733_v26  ;;  %v1478_v35 = vor.u32 %v1939_v34, %v1477_v33  ;;  %v1457_v36 = vld [vmem:[%s3118_s0 + $0x18] sm:$0xf]  ;;  %v1935_v37 = vld [vmem:[%s3118_s0 + $0x20] sm:$0xf0]  ;;  %v1934_v40 = vld [vmem:[%s3118_s0 + $0x1c] sm:$0xf] }
   0xc   :  { %v1745_v38 = vld [vmem:[%s3118_s0 + $0x258] sm:$0xf]  ;;  %v2007_v39 = vld [vmem:[%s3118_s0 + $0x260] sm:$0xf0]  ;;  %v1459_v41 = vld [vmem:[%s3118_s0 + $0x24] sm:$0xf0]  ;;  %v1458_v42 = vor.u32 %v1935_v37, %v1457_v36 }
   0xd   :  { %v1746_v43 = vor.u32 %v2007_v39, %v1745_v38  ;;  %v1462_v44 = vor.u32 %v1934_v40, %v1459_v41  ;;  %v1489_v45 = vld [vmem:[%s3118_s0 + $0x50] sm:$0xf]  ;;  %v1942_v46 = vld [vmem:[%s3118_s0 + $0x58] sm:$0xf0]  ;;  %v1937_v52 = vld [vmem:[%s3118_s0 + $0x34] sm:$0xf] }
   0xe   :  { %871 = vmatpush.bf16.msra.mxu0 %v2031_v11  ;;  %v1490_v47 = vor.u32 %v1942_v46, %v1489_v45  ;;  %v1469_v48 = vld [vmem:[%s3118_s0 + $0x30] sm:$0xf]  ;;  %v1938_v49 = vld [vmem:[%s3118_s0 + $0x38] sm:$0xf0]  ;;  %v1471_v53 = vld [vmem:[%s3118_s0 + $0x3c] sm:$0xf0] }
   0xf   :  { %2048 = vmatpush.bf16.msra.mxu3 %v2031_v11  ;;  %1040 = vmatpush.bf16.msra.mxu1 %v2039_v12  ;;  %v1757_v50 = vld [vmem:[%s3118_s0 + $0x270] sm:$0xf]  ;;  %v2010_v51 = vld [vmem:[%s3118_s0 + $0x278] sm:$0xf0]  ;;  %v1470_v54 = vor.u32 %v1938_v49, %v1469_v48  ;;  %v1474_v56 = vor.u32 %v1937_v52, %v1471_v53  ;;  %v1501_v57 = vld [vmem:[%s3118_s0 + $0x68] sm:$0xf] }
  0x10   :  { %v1758_v55 = vor.u32 %v2010_v51, %v1757_v50  ;;  %v1945_v58 = vld [vmem:[%s3118_s0 + $0x70] sm:$0xf0]  ;;  %v1481_v60 = vld [vmem:[%s3118_s0 + $0x48] sm:$0xf]  ;;  %v1940_v0 = vld [vmem:[%s3118_s0 + $0x4c] sm:$0xf] }
  0x11   :  { %v1502_v59 = vor.u32 %v1945_v58, %v1501_v57  ;;  %v1941_v61 = vld [vmem:[%s3118_s0 + $0x50] sm:$0xf0]  ;;  %v1769_v62 = vld [vmem:[%s3118_s0 + $0x288] sm:$0xf]  ;;  %v1948_v6 = vld [vmem:[%s3118_s0 + $0x88] sm:$0xf0] }
  0x12   :  { %872 = vmatpush.bf16.msra.mxu0 %v2030_v13  ;;  %v2013_v63 = vld [vmem:[%s3118_s0 + $0x290] sm:$0xf0]  ;;  %v1493_v8 = vld [vmem:[%s3118_s0 + $0x60] sm:$0xf]  ;;  %v1944_v9 = vld [vmem:[%s3118_s0 + $0x68] sm:$0xf0] }
  0x13   :  { %2049 = vmatpush.bf16.msra.mxu3 %v2030_v13  ;;  %1041 = vmatpush.bf16.msra.mxu1 %v2038_v14  ;;  %v1770_v3 = vor.u32 %v2013_v63, %v1769_v62  ;;  %v2016_v11 = vld [vmem:[%s3118_s0 + $0x2a8] sm:$0xf0]  ;;  %v1495_v13 = vld [vmem:[%s3118_s0 + $0x6c] sm:$0xf0]  ;;  %v1525_v17 = vld [vmem:[%s3118_s0 + $0x98] sm:$0xf] }
  0x14   :  { %v1951_v18 = vld [vmem:[%s3118_s0 + $0xa0] sm:$0xf0]  ;;  %v1946_v24 = vld [vmem:[%s3118_s0 + $0x7c] sm:$0xf]  ;;  %v1507_v25 = vld [vmem:[%s3118_s0 + $0x84] sm:$0xf0] }
  0x15   :  { %v1510_v28 = vor.u32 %v1946_v24, %v1507_v25  ;;  %v1537_v29 = vld [vmem:[%s3118_s0 + $0xb0] sm:$0xf]  ;;  %v1950_v33 = vld [vmem:[%s3118_s0 + $0x98] sm:$0xf0]  ;;  %v1949_v36 = vld [vmem:[%s3118_s0 + $0x94] sm:$0xf] }
  0x16   :  { %873 = vmatpush.bf16.msra.mxu0 %v2029_v15  ;;  %v1805_v34 = vld [vmem:[%s3118_s0 + $0x2d0] sm:$0xf]  ;;  %v1519_v37 = vld [vmem:[%s3118_s0 + $0x9c] sm:$0xf0]  ;;  %v1549_v41 = vld [vmem:[%s3118_s0 + $0xc8] sm:$0xf] }
  0x17   :  { %2050 = vmatpush.bf16.msra.mxu3 %v2029_v15  ;;  %1042 = vmatpush.bf16.msra.mxu1 %v2037_v16  ;;  %v1522_v40 = vor.u32 %v1949_v36, %v1519_v37  ;;  %v1953_v45 = vld [vmem:[%s3118_s0 + $0xb0] sm:$0xf0]  ;;  %v1817_v46 = vld [vmem:[%s3118_s0 + $0x2e8] sm:$0xf]  ;;  %v1952_v48 = vld [vmem:[%s3118_s0 + $0xac] sm:$0xf] }
  0x18   :  { %v1531_v49 = vld [vmem:[%s3118_s0 + $0xb4] sm:$0xf0]  ;;  %v2363_v58 = vld [vmem:[%s3119_s2] ss:$0 sm:$0xff]  ;;  %v1735_v62 = vld [vmem:[%s3118_s0 + $0x24c] sm:$0xf0] }
  0x19   :  { %v1534_v53 = vor.u32 %v1952_v48, %v1531_v49  ;;  %v1955_v63 = vld [vmem:[%s3118_s0 + $0xc4] sm:$0xf]  ;;  %v1958_v24 = vld [vmem:[%s3118_s0 + $0xdc] sm:$0xf]  ;;  %v1555_v25 = vld [vmem:[%s3118_s0 + $0xe4] sm:$0xf0] }
  0x1a   :  { %1900 = vmatmul.msk.bf16.gmra.mxu2 %vm771_vm0, %v1466_v19  ;;  %874 = vmatpush.bf16.msra.mxu0 %v2028_v20  ;;  %v1526_v19 = vor.u32 %v1951_v18, %v1525_v17  ;;  %v1585_v36 = vld [vmem:[%s3118_s0 + $0x110] sm:$0xf]  ;;  %v1966_v37 = vld [vmem:[%s3118_s0 + $0x118] sm:$0xf0]  ;;  %v1759_v49 = vld [vmem:[%s3118_s0 + $0x27c] sm:$0xf0] }
  0x1b   :  { %2051 = vmatpush.bf16.msra.mxu3 %v2028_v20  ;;  %1043 = vmatpush.bf16.msra.mxu1 %v2036_v21  ;;  %v1505_v20 = vld [vmem:[%s3118_s0 + $0x78] sm:$0xf] }
  0x1e   :  { %875 = vmatpush.bf16.msra.mxu0 %v2027_v22 }
  0x1f   :  { %2052 = vmatpush.bf16.msra.mxu3 %v2027_v22  ;;  %1044 = vmatpush.bf16.msra.mxu1 %v2035_v23  ;;  %v1793_v22 = vld [vmem:[%s3118_s0 + $0x2b8] sm:$0xf] }
  0x21   :  { %876 = vmatmul.bf16.vlgmr.msra.gmra.mxu0 %v1446_v30  ;;  %v1954_v30 = vld [vmem:[%s3118_s0 + $0xb8] sm:$0xf0] }
  0x22   :  { %996 = vmatmul.bf16.vlgmr.msra.gmra.mxu3 %v1734_v31  ;;  %1045 = vmatmul.bf16.vlgmr.msra.gmra.mxu1 %v1450_v32  ;;  %v1538_v31 = vor.u32 %v1954_v30, %v1537_v29  ;;  %v1517_v32 = vld [vmem:[%s3118_s0 + $0x90] sm:$0xf] }
  0x23   :  { %2053 = vmatpush.bf16.msrb.mxu3 %v2042_v2  ;;  %v1482_v2 = vor.u32 %v1941_v61, %v1481_v60  ;;  %v1518_v38 = vor.u32 %v1950_v33, %v1517_v32  ;;  %v1956_v60 = vld [vmem:[%s3118_s0 + $0xc8] sm:$0xf0]  ;;  %v2003_v61 = vld [vmem:[%s3118_s0 + $0x244] sm:$0xf] }
  0x27   :  { %2054 = vmatpush.bf16.msrb.mxu3 %v2041_v5  ;;  %v1513_v5 = vld [vmem:[%s3118_s0 + $0x80] sm:$0xf] }
  0x28   :  { %v1514_v7 = vor.u32 %v1948_v6, %v1513_v5 }
  0x2a   :  { %1901 = vmatmul.msk.bf16.gmra.mxu2 %vm771_vm0, %v1478_v35  ;;  %v2022_v35 = vld [vmem:[%s3118_s0 + $0x2d8] sm:$0xf0] }
  0x2b   :  { %2055 = vmatpush.bf16.msrb.mxu3 %v2040_v10  ;;  %v1781_v10 = vld [vmem:[%s3118_s0 + $0x2a0] sm:$0xf]  ;;  %v1806_v39 = vor.u32 %v2022_v35, %v1805_v34 }
  0x2c   :  { %v1782_v15 = vor.u32 %v2016_v11, %v1781_v10  ;;  %v1573_v10 = vld [vmem:[%s3118_s0 + $0xf8] sm:$0xf]  ;;  %v1963_v11 = vld [vmem:[%s3118_s0 + $0x100] sm:$0xf0] }
  0x2f   :  { %2056 = vmatpush.bf16.msrb.mxu3 %v2039_v12  ;;  %v1943_v12 = vld [vmem:[%s3118_s0 + $0x64] sm:$0xf] }
  0x31   :  { %881 = vmatmul.bf16.gmra.mxu0 %v1458_v42  ;;  %v1957_v42 = vld [vmem:[%s3118_s0 + $0xd0] sm:$0xf0] }
  0x32   :  { %1001 = vmatmul.bf16.gmra.mxu3 %v1746_v43  ;;  %1050 = vmatmul.bf16.gmra.mxu1 %v1462_v44  ;;  %v1550_v43 = vor.u32 %v1957_v42, %v1549_v41  ;;  %v1529_v44 = vld [vmem:[%s3118_s0 + $0xa8] sm:$0xf]  ;;  %v1586_v41 = vor.u32 %v1966_v37, %v1585_v36  ;;  %v1589_v36 = vld [vmem:[%s3118_s0 + $0x120] sm:$0xf]  ;;  %v1968_v37 = vld [vmem:[%s3118_s0 + $0x128] sm:$0xf0] }
  0x33   :  { %2057 = vmatpush.bf16.msrb.mxu3 %v2038_v14  ;;  %v1494_v14 = vor.u32 %v1944_v9, %v1493_v8  ;;  %v1530_v51 = vor.u32 %v1953_v45, %v1529_v44  ;;  %v1565_v45 = vld [vmem:[%s3118_s0 + $0xf0] sm:$0xf] }
  0x37   :  { %2058 = vmatpush.bf16.msrb.mxu3 %v2037_v16  ;;  %v1498_v16 = vor.u32 %v1943_v12, %v1495_v13 }
  0x3a   :  { %1902 = vmatmul.msk.bf16.gmra.mxu2 %vm771_vm0, %v1490_v47  ;;  %v2025_v47 = vld [vmem:[%s3118_s0 + $0x2f0] sm:$0xf0] }
  0x3b   :  { %2059 = vmatpush.bf16.msrb.mxu3 %v2036_v21  ;;  %v1947_v21 = vld [vmem:[%s3118_s0 + $0x80] sm:$0xf0]  ;;  %v1818_v52 = vor.u32 %v2025_v47, %v1817_v46  ;;  %v1962_v46 = vld [vmem:[%s3118_s0 + $0xf8] sm:$0xf0]  ;;  %v2009_v47 = vld [vmem:[%s3118_s0 + $0x274] sm:$0xf] }
  0x3c   :  { %v1506_v26 = vor.u32 %v1947_v21, %v1505_v20  ;;  %v1959_v20 = vld [vmem:[%s3118_s0 + $0xe0] sm:$0xf0]  ;;  %v2006_v21 = vld [vmem:[%s3118_s0 + $0x25c] sm:$0xf] }
  0x3f   :  { %2060 = vmatpush.bf16.msrb.mxu3 %v2035_v23  ;;  %v2019_v23 = vld [vmem:[%s3118_s0 + $0x2c0] sm:$0xf0] }
  0x40   :  { %v1794_v27 = vor.u32 %v2019_v23, %v1793_v22  ;;  %v1747_v23 = vld [vmem:[%s3118_s0 + $0x264] sm:$0xf0] }
  0x41   :  { %886 = vmatmul.bf16.gmra.mxu0 %v1470_v54  ;;  %v1561_v54 = vld [vmem:[%s3118_s0 + $0xe0] sm:$0xf]  ;;  %v1750_v30 = vor.u32 %v2006_v21, %v1747_v23 }
  0x42   :  { %1006 = vmatmul.bf16.gmra.mxu3 %v1758_v55  ;;  %1055 = vmatmul.bf16.gmra.mxu1 %v1474_v56  ;;  %v1960_v55 = vld [vmem:[%s3118_s0 + $0xe8] sm:$0xf0] }
  0x43   :  { %2061 = vmatpush.bf16.msra.mxu3 %v2091_v1  ;;  %v1483_v1 = vld [vmem:[%s3118_s0 + $0x54] sm:$0xf0]  ;;  %v1562_v57 = vor.u32 %v1960_v55, %v1561_v54  ;;  %v1566_v54 = vor.u32 %v1962_v46, %v1565_v45  ;;  %v1590_v46 = vor.u32 %v1968_v37, %v1589_v36  ;;  %v1807_v36 = vld [vmem:[%s3118_s0 + $0x2dc] sm:$0xf0]  ;;  %v1973_v37 = vld [vmem:[%s3118_s0 + $0x154] sm:$0xf] }
  0x47   :  { %2062 = vmatpush.bf16.msra.mxu3 %v2102_v4  ;;  %v1486_v4 = vor.u32 %v1940_v0, %v1483_v1  ;;  %v1543_v0 = vld [vmem:[%s3118_s0 + $0xcc] sm:$0xf0] }
  0x48   :  { %v1546_v5 = vor.u32 %v1955_v63, %v1543_v0  ;;  %v1597_v63 = vld [vmem:[%s3118_s0 + $0x128] sm:$0xf]  ;;  %v1969_v0 = vld [vmem:[%s3118_s0 + $0x130] sm:$0xf0] }
  0x4a   :  { %1903 = vmatmul.msk.bf16.gmra.mxu2 %vm771_vm0, %v1502_v59  ;;  %v1541_v59 = vld [vmem:[%s3118_s0 + $0xc0] sm:$0xf] }
  0x51   :  { %891 = vmatmul.bf16.gmra.mxu0 %v1482_v2  ;;  %v1542_v2 = vor.u32 %v1956_v60, %v1541_v59 }
  0x52   :  { %1011 = vmatmul.bf16.gmra.mxu3 %v1770_v3  ;;  %1060 = vmatmul.bf16.gmra.mxu1 %v1486_v4  ;;  %v1738_v4 = vor.u32 %v2003_v61, %v1735_v62 }
  0x5a   :  { %1904 = vmatmul.msk.bf16.gmra.mxu2 %vm771_vm0, %v1514_v7 }
  0x61   :  { %896 = vmatmul.bf16.gmra.mxu0 %v1494_v14 }
  0x62   :  { %1016 = vmatmul.bf16.gmra.mxu3 %v1782_v15  ;;  %1065 = vmatmul.bf16.gmra.mxu1 %v1498_v16  ;;  %v1574_v15 = vor.u32 %v1963_v11, %v1573_v10  ;;  %v2012_v10 = vld [vmem:[%s3118_s0 + $0x28c] sm:$0xf] }
  0x6a   :  { %1905 = vmatmul.msk.bf16.gmra.mxu2 %vm771_vm0, %v1526_v19  ;;  %v1553_v19 = vld [vmem:[%s3118_s0 + $0xd8] sm:$0xf] }
  0x71   :  { %901 = vmatmul.bf16.gmra.mxu0 %v1506_v26 }
  0x72   :  { %1021 = vmatmul.bf16.gmra.mxu3 %v1794_v27  ;;  %1070 = vmatmul.bf16.gmra.mxu1 %v1510_v28  ;;  %v1554_v28 = vor.u32 %v1959_v20, %v1553_v19 }
  0x7a   :  { %1906 = vmatmul.msk.bf16.gmra.mxu2 %vm771_vm0, %v1538_v31  ;;  %v1558_v31 = vor.u32 %v1958_v24, %v1555_v25 }
  0x81   :  { %906 = vmatmul.bf16.gmra.mxu0 %v1518_v38 }
  0x82   :  { %1026 = vmatmul.bf16.gmra.mxu3 %v1806_v39  ;;  %1075 = vmatmul.bf16.gmra.mxu1 %v1522_v40 }
  0x8a   :  { %1907 = vmatmul.msk.bf16.gmra.mxu2 %vm771_vm0, %v1550_v43 }
  0x8d   :  { %v1215_v50 = vpop.f32.mrf.mxu2 }
  0x91   :  { %911 = vmatmul.bf16.gmra.mxu0 %v1530_v51  ;;  %v1567_v51 = vld [vmem:[%s3118_s0 + $0xfc] sm:$0xf0] }
  0x92   :  { %1031 = vmatmul.bf16.gmra.mxu3 %v1818_v52  ;;  %1080 = vmatmul.bf16.gmra.mxu1 %v1534_v53 }
  0x95   :  { %v1217_v56 = vpop.f32.mrf.mxu2 }
  0x9a   :  { %1908 = vmatmul.msk.bf16.gmra.mxu2 %vm771_vm0, %v1562_v57 }
  0x9d   :  { %v1220_v1 = vpop.f32.mrf.mxu2 }
  0x9e   :  { %v877_v3 = vpop.f32.mrf.mxu0 }
  0x9f   :  { %v878_v6 = vadd.f32 %v2363_v58, %v877_v3  ;;  %v1046_v7 = vpop.f32.mrf.mxu1 }
  0xa1   :  { %v1047_v8 = vadd.f32 %v1046_v7, %v878_v6  ;;  %916 = vmatmul.bf16.gmra.mxu0 %v1542_v2 }
  0xa2   :  { %1165 = vmatmul.bf16.vlgmr.msrb.gmra.mxu3 %v1738_v4  ;;  %1085 = vmatmul.bf16.gmra.mxu1 %v1546_v5  ;;  %v1598_v4 = vor.u32 %v1969_v0, %v1597_v63 }
  0xa3   :  { %v1216_v9 = vadd.f32 %v1215_v50, %v1047_v8  ;;  %v1961_v50 = vld [vmem:[%s3118_s0 + $0xf4] sm:$0xf]  ;;  %v1577_v8 = vld [vmem:[%s3118_s0 + $0x108] sm:$0xf] }
  0xa4   :  { %v1570_v57 = vor.u32 %v1961_v50, %v1567_v51 }
  0xa5   :  { %1375 = vst [vmem:[%s3120_s3] sm:$0xff] %v1216_v9  ;;  %v2394_v12 = vpop.f32.mrf.mxu3  ;;  %v1222_v13 = vpop.f32.mrf.mxu2  ;;  %v1965_v9 = vld [vmem:[%s3118_s0 + $0x110] sm:$0xf0] }
  0xa6   :  { %v879_v14 = vpop.f32.mrf.mxu0 }
  0xa7   :  { %v880_v16 = vadd.f32 %v2363_v58, %v879_v14  ;;  %v1048_v17 = vpop.f32.mrf.mxu1  ;;  %v1964_v14 = vld [vmem:[%s3118_s0 + $0x10c] sm:$0xf] }
  0xa9   :  { %v1049_v18 = vadd.f32 %v1048_v17, %v880_v16 }
  0xaa   :  { %1909 = vmatmul.msk.bf16.gmra.mxu2 %vm771_vm0, %v1574_v15  ;;  %v1579_v15 = vld [vmem:[%s3118_s0 + $0x114] sm:$0xf0] }
  0xab   :  { %v1218_v22 = vadd.f32 %v1217_v56, %v1049_v18  ;;  %v1762_v56 = vor.u32 %v2009_v47, %v1759_v49  ;;  %v1578_v18 = vor.u32 %v1965_v9, %v1577_v8  ;;  %v1582_v21 = vor.u32 %v1964_v14, %v1579_v15  ;;  %v1603_v8 = vld [vmem:[%s3118_s0 + $0x144] sm:$0xf0] }
  0xad   :  { %1376 = vst [vmem:[%s3120_s3 + $0x8] sm:$0xff] %v1218_v22  ;;  %v2419_v26 = vpop.f32.mrf.mxu3  ;;  %v1225_v27 = vpop.f32.mrf.mxu2 }
  0xae   :  { %v882_v29 = vpop.f32.mrf.mxu0 }
  0xaf   :  { %v883_v32 = vadd.f32 %v2363_v58, %v882_v29  ;;  %v1051_v33 = vpop.f32.mrf.mxu1 }
  0xb1   :  { %v1052_v34 = vadd.f32 %v1051_v33, %v883_v32  ;;  %921 = vmatmul.bf16.gmra.mxu0 %v1554_v28  ;;  %v1972_v28 = vld [vmem:[%s3118_s0 + $0x148] sm:$0xf0] }
  0xb2   :  { %1170 = vmatmul.bf16.gmra.mxu3 %v1750_v30  ;;  %1090 = vmatmul.bf16.gmra.mxu1 %v1558_v31 }
  0xb3   :  { %v1221_v35 = vadd.f32 %v1220_v1, %v1052_v34 }
  0xb5   :  { %1377 = vst [vmem:[%s3120_s3 + $0x10] sm:$0xff] %v1221_v35  ;;  %v2431_v38 = vpop.f32.mrf.mxu3  ;;  %v1227_v39 = vpop.f32.mrf.mxu2 }
  0xb6   :  { %v884_v40 = vpop.f32.mrf.mxu0 }
  0xb7   :  { %v885_v42 = vadd.f32 %v2363_v58, %v884_v40  ;;  %v1053_v43 = vpop.f32.mrf.mxu1 }
  0xb9   :  { %v1054_v44 = vadd.f32 %v1053_v43, %v885_v42  ;;  %v1967_v42 = vld [vmem:[%s3118_s0 + $0x124] sm:$0xf]  ;;  %v1591_v43 = vld [vmem:[%s3118_s0 + $0x12c] sm:$0xf0] }
  0xba   :  { %1910 = vmatmul.msk.bf16.gmra.mxu2 %vm771_vm0, %v1586_v41  ;;  %v1783_v41 = vld [vmem:[%s3118_s0 + $0x2ac] sm:$0xf0]  ;;  %v1594_v49 = vor.u32 %v1967_v42, %v1591_v43 }
  0xbb   :  { %v1223_v48 = vadd.f32 %v1222_v13, %v1054_v44  ;;  %v1771_v13 = vld [vmem:[%s3118_s0 + $0x294] sm:$0xf0] }
  0xbc   :  { %v1774_v20 = vor.u32 %v2012_v10, %v1771_v13 }
  0xbd   :  { %1378 = vst [vmem:[%s3120_s3 + $0x18] sm:$0xff] %v1223_v48  ;;  %v2456_v52 = vpop.f32.mrf.mxu3  ;;  %v1230_v53 = vpop.f32.mrf.mxu2 }
  0xbe   :  { %v887_v55 = vpop.f32.mrf.mxu0 }
  0xbf   :  { %v888_v59 = vadd.f32 %v2363_v58, %v887_v55  ;;  %v1056_v60 = vpop.f32.mrf.mxu1  ;;  %v1621_v55 = vld [vmem:[%s3118_s0 + $0x158] sm:$0xf] }
  0xc1   :  { %v1057_v61 = vadd.f32 %v1056_v60, %v888_v59  ;;  %926 = vmatmul.bf16.gmra.mxu0 %v1566_v54 }
  0xc2   :  { %1175 = vmatmul.bf16.gmra.mxu3 %v1762_v56  ;;  %1095 = vmatmul.bf16.gmra.mxu1 %v1570_v57  ;;  %v1975_v56 = vld [vmem:[%s3118_s0 + $0x160] sm:$0xf0] }
  0xc3   :  { %v1226_v62 = vadd.f32 %v1225_v27, %v1057_v61  ;;  %v1609_v27 = vld [vmem:[%s3118_s0 + $0x140] sm:$0xf]  ;;  %v1622_v61 = vor.u32 %v1975_v56, %v1621_v55 }
  0xc4   :  { %v1610_v32 = vor.u32 %v1972_v28, %v1609_v27 }
  0xc5   :  { %1379 = vst [vmem:[%s3120_s3 + $0x20] sm:$0xff] %v1226_v62  ;;  %v2468_v1 = vpop.f32.mrf.mxu3  ;;  %v1232_v2 = vpop.f32.mrf.mxu2 }
  0xc6   :  { %v889_v3 = vpop.f32.mrf.mxu0 }
  0xc7   :  { %v890_v5 = vadd.f32 %v2363_v58, %v889_v3  ;;  %v1058_v6 = vpop.f32.mrf.mxu1  ;;  %v1971_v3 = vld [vmem:[%s3118_s0 + $0x140] sm:$0xf0] }
  0xc9   :  { %v1059_v7 = vadd.f32 %v1058_v6, %v890_v5  ;;  %v1795_v6 = vld [vmem:[%s3118_s0 + $0x2c4] sm:$0xf0] }
  0xca   :  { %1911 = vmatmul.msk.bf16.gmra.mxu2 %vm771_vm0, %v1598_v4  ;;  %v2018_v4 = vld [vmem:[%s3118_s0 + $0x2bc] sm:$0xf] }
  0xcb   :  { %v1228_v11 = vadd.f32 %v1227_v39, %v1059_v7  ;;  %v2015_v39 = vld [vmem:[%s3118_s0 + $0x2a4] sm:$0xf]  ;;  %v1970_v7 = vld [vmem:[%s3118_s0 + $0x13c] sm:$0xf]  ;;  %v1798_v14 = vor.u32 %v2018_v4, %v1795_v6  ;;  %v1819_v4 = vld [vmem:[%s3118_s0 + $0x2f4] sm:$0xf0] }
  0xcc   :  { %v1786_v48 = vor.u32 %v2015_v39, %v1783_v41  ;;  %v1606_v15 = vor.u32 %v1970_v7, %v1603_v8  ;;  %v1615_v39 = vld [vmem:[%s3118_s0 + $0x15c] sm:$0xf0]  ;;  %v1627_v6 = vld [vmem:[%s3118_s0 + $0x174] sm:$0xf0] }
  0xcd   :  { %1380 = vst [vmem:[%s3120_s3 + $0x28] sm:$0xff] %v1228_v11  ;;  %v2493_v16 = vpop.f32.mrf.mxu3  ;;  %v1235_v17 = vpop.f32.mrf.mxu2 }
  0xce   :  { %v892_v19 = vpop.f32.mrf.mxu0 }
  0xcf   :  { %v893_v22 = vadd.f32 %v2363_v58, %v892_v19  ;;  %v1061_v23 = vpop.f32.mrf.mxu1 }
  0xd1   :  { %v1062_v24 = vadd.f32 %v1061_v23, %v893_v22  ;;  %931 = vmatmul.bf16.gmra.mxu0 %v1578_v18  ;;  %v1978_v22 = vld [vmem:[%s3118_s0 + $0x178] sm:$0xf0] }
  0xd2   :  { %1180 = vmatmul.bf16.gmra.mxu3 %v1774_v20  ;;  %1100 = vmatmul.bf16.gmra.mxu1 %v1582_v21  ;;  %v1633_v21 = vld [vmem:[%s3118_s0 + $0x170] sm:$0xf] }
  0xd3   :  { %v1231_v25 = vadd.f32 %v1230_v53, %v1062_v24  ;;  %v1634_v27 = vor.u32 %v1978_v22, %v1633_v21  ;;  %v1984_v21 = vld [vmem:[%s3118_s0 + $0x1a8] sm:$0xf0] }
  0xd5   :  { %1381 = vst [vmem:[%s3120_s3 + $0x30] sm:$0xff] %v1231_v25  ;;  %v2505_v29 = vpop.f32.mrf.mxu3  ;;  %v1237_v30 = vpop.f32.mrf.mxu2 }
  0xd6   :  { %v894_v31 = vpop.f32.mrf.mxu0 }
  0xd7   :  { %v895_v33 = vadd.f32 %v2363_v58, %v894_v31  ;;  %v1063_v34 = vpop.f32.mrf.mxu1 }
  0xd9   :  { %v1064_v35 = vadd.f32 %v1063_v34, %v895_v33  ;;  %v1974_v33 = vld [vmem:[%s3118_s0 + $0x158] sm:$0xf0]  ;;  %v2021_v34 = vld [vmem:[%s3118_s0 + $0x2d4] sm:$0xf] }
  0xda   :  { %1912 = vmatmul.msk.bf16.gmra.mxu2 %vm771_vm0, %v1610_v32  ;;  %v1613_v32 = vld [vmem:[%s3118_s0 + $0x150] sm:$0xf] }
  0xdb   :  { %v1233_v40 = vadd.f32 %v1232_v2, %v1064_v35  ;;  %v1601_v2 = vld [vmem:[%s3118_s0 + $0x138] sm:$0xf]  ;;  %v1614_v42 = vor.u32 %v1974_v33, %v1613_v32  ;;  %v1637_v32 = vld [vmem:[%s3118_s0 + $0x180] sm:$0xf]  ;;  %v1980_v33 = vld [vmem:[%s3118_s0 + $0x188] sm:$0xf0] }
  0xdc   :  { %v1602_v11 = vor.u32 %v1971_v3, %v1601_v2  ;;  %v2024_v2 = vld [vmem:[%s3118_s0 + $0x2ec] sm:$0xf] }
  0xdd   :  { %1382 = vst [vmem:[%s3120_s3 + $0x38] sm:$0xff] %v1233_v40  ;;  %v2530_v44 = vpop.f32.mrf.mxu3  ;;  %v1240_v45 = vpop.f32.mrf.mxu2 }
  0xde   :  { %v897_v47 = vpop.f32.mrf.mxu0 }
  0xdf   :  { %v898_v50 = vadd.f32 %v2363_v58, %v897_v47  ;;  %v1066_v51 = vpop.f32.mrf.mxu1 }
  0xe1   :  { %v1067_v53 = vadd.f32 %v1066_v51, %v898_v50  ;;  %936 = vmatmul.bf16.gmra.mxu0 %v1590_v46  ;;  %v1618_v46 = vor.u32 %v1973_v37, %v1615_v39  ;;  %v1645_v51 = vld [vmem:[%s3118_s0 + $0x188] sm:$0xf]  ;;  %v1979_v37 = vld [vmem:[%s3118_s0 + $0x184] sm:$0xf]  ;;  %v1639_v39 = vld [vmem:[%s3118_s0 + $0x18c] sm:$0xf0] }
  0xe2   :  { %1185 = vmatmul.bf16.gmra.mxu3 %v1786_v48  ;;  %1105 = vmatmul.bf16.gmra.mxu1 %v1594_v49 }
  0xe3   :  { %v1236_v54 = vadd.f32 %v1235_v17, %v1067_v53  ;;  %v1981_v53 = vld [vmem:[%s3118_s0 + $0x190] sm:$0xf0] }
  0xe5   :  { %1383 = vst [vmem:[%s3120_s3 + $0x40] sm:$0xff] %v1236_v54  ;;  %v2542_v57 = vpop.f32.mrf.mxu3  ;;  %v1242_v59 = vpop.f32.mrf.mxu2 }
  0xe6   :  { %v899_v60 = vpop.f32.mrf.mxu0 }
  0xe7   :  { %v900_v62 = vadd.f32 %v2363_v58, %v899_v60  ;;  %v1068_v63 = vpop.f32.mrf.mxu1 }
  0xe9   :  { %v1069_v0 = vadd.f32 %v1068_v63, %v900_v62  ;;  %v1625_v63 = vld [vmem:[%s3118_s0 + $0x168] sm:$0xf] }
  0xea   :  { %1913 = vmatmul.msk.bf16.gmra.mxu2 %vm771_vm0, %v1622_v61 }
  0xeb   :  { %v1238_v5 = vadd.f32 %v1237_v30, %v1069_v0  ;;  %v1977_v0 = vld [vmem:[%s3118_s0 + $0x170] sm:$0xf0] }
  0xed   :  { %1384 = vst [vmem:[%s3120_s3 + $0x48] sm:$0xff] %v1238_v5  ;;  %v2567_v9 = vpop.f32.mrf.mxu3  ;;  %v1245_v10 = vpop.f32.mrf.mxu2  ;;  %v1976_v5 = vld [vmem:[%s3118_s0 + $0x16c] sm:$0xf] }
  0xee   :  { %v902_v13 = vpop.f32.mrf.mxu0 }
  0xef   :  { %v903_v17 = vadd.f32 %v2363_v58, %v902_v13  ;;  %v1071_v18 = vpop.f32.mrf.mxu1  ;;  %v1822_v13 = vor.u32 %v2024_v2, %v1819_v4  ;;  %v1983_v4 = vld [vmem:[%s3118_s0 + $0x1a0] sm:$0xf0] }
  0xf1   :  { %v1072_v19 = vadd.f32 %v1071_v18, %v903_v17  ;;  %941 = vmatmul.bf16.gmra.mxu0 %v1602_v11 }
  0xf2   :  { %1190 = vmatmul.bf16.gmra.mxu3 %v1798_v14  ;;  %1110 = vmatmul.bf16.gmra.mxu1 %v1606_v15  ;;  %v1630_v14 = vor.u32 %v1976_v5, %v1627_v6  ;;  %v1777_v5 = vld [vmem:[%s3118_s0 + $0x290] sm:$0xf] }
  0xf3   :  { %v1241_v20 = vadd.f32 %v1240_v45, %v1072_v19  ;;  %v1810_v45 = vor.u32 %v2021_v34, %v1807_v36  ;;  %v1765_v34 = vld [vmem:[%s3118_s0 + $0x278] sm:$0xf]  ;;  %v2011_v36 = vld [vmem:[%s3118_s0 + $0x280] sm:$0xf0] }
  0xf5   :  { %1385 = vst [vmem:[%s3120_s3 + $0x50] sm:$0xff] %v1241_v20  ;;  %v2579_v23 = vpop.f32.mrf.mxu3  ;;  %v1247_v24 = vpop.f32.mrf.mxu2  ;;  %v1657_v20 = vld [vmem:[%s3118_s0 + $0x1a0] sm:$0xf] }
  0xf6   :  { %v904_v25 = vpop.f32.mrf.mxu0 }
  0xf7   :  { %v905_v28 = vadd.f32 %v2363_v58, %v904_v25  ;;  %v1073_v30 = vpop.f32.mrf.mxu1 }
  0xf9   :  { %v1074_v31 = vadd.f32 %v1073_v30, %v905_v28 }
  0xfa   :  { %1914 = vmatmul.msk.bf16.gmra.mxu2 %vm771_vm0, %v1634_v27  ;;  %v1658_v27 = vor.u32 %v1984_v21, %v1657_v20 }
  0xfb   :  { %v1243_v35 = vadd.f32 %v1242_v59, %v1074_v31  ;;  %v1646_v59 = vor.u32 %v1981_v53, %v1645_v51  ;;  %v1669_v53 = vld [vmem:[%s3118_s0 + $0x1b8] sm:$0xf] }
  0xfd   :  { %1386 = vst [vmem:[%s3120_s3 + $0x58] sm:$0xff] %v1243_v35  ;;  %v2604_v40 = vpop.f32.mrf.mxu3  ;;  %v1250_v41 = vpop.f32.mrf.mxu2 }
  0xfe   :  { %v907_v43 = vpop.f32.mrf.mxu0 }
  0xff   :  { %v908_v47 = vadd.f32 %v2363_v58, %v907_v43  ;;  %v1076_v48 = vpop.f32.mrf.mxu1  ;;  %v1638_v43 = vor.u32 %v1980_v33, %v1637_v32 }
 0x101   :  { %v1077_v49 = vadd.f32 %v1076_v48, %v908_v47  ;;  %946 = vmatmul.bf16.gmra.mxu0 %v1614_v42  ;;  %v1642_v47 = vor.u32 %v1979_v37, %v1639_v39 }
 0x102   :  { %1195 = vmatmul.bf16.gmra.mxu3 %v1810_v45  ;;  %1115 = vmatmul.bf16.gmra.mxu1 %v1618_v46  ;;  %v1766_v46 = vor.u32 %v2011_v36, %v1765_v34 }
 0x103   :  { %v1246_v50 = vadd.f32 %v1245_v10, %v1077_v49  ;;  %v1626_v10 = vor.u32 %v1977_v0, %v1625_v63 }
 0x105   :  { %1387 = vst [vmem:[%s3120_s3 + $0x60] sm:$0xff] %v1246_v50  ;;  %v2616_v54 = vpop.f32.mrf.mxu3  ;;  %v1252_v55 = vpop.f32.mrf.mxu2 }
 0x106   :  { %v909_v56 = vpop.f32.mrf.mxu0 }
 0x107   :  { %v910_v60 = vadd.f32 %v2363_v58, %v909_v56  ;;  %v1078_v61 = vpop.f32.mrf.mxu1  ;;  %v998_v56 = vadd.f32 %v2363_v58, %v2394_v12  ;;  %v1649_v12 = vld [vmem:[%s3118_s0 + $0x198] sm:$0xf] }
 0x109   :  { %v1079_v62 = vadd.f32 %v1078_v61, %v910_v60 }
 0x10a   :  { %1915 = vmatmul.msk.bf16.gmra.mxu2 %vm771_vm0, %v1646_v59 }
 0x10b   :  { %v1248_v3 = vadd.f32 %v1247_v24, %v1079_v62 }
 0x10d   :  { %1388 = vst [vmem:[%s3120_s3 + $0x68] sm:$0xff] %v1248_v3  ;;  %v2641_v7 = vpop.f32.mrf.mxu3  ;;  %v1255_v8 = vpop.f32.mrf.mxu2 }
 0x10e   :  { %v912_v11 = vpop.f32.mrf.mxu0 }
 0x10f   :  { %v913_v15 = vadd.f32 %v2363_v58, %v912_v11  ;;  %v1081_v17 = vpop.f32.mrf.mxu1  ;;  %v1651_v11 = vld [vmem:[%s3118_s0 + $0x1a4] sm:$0xf0] }
 0x111   :  { %v1082_v18 = vadd.f32 %v1081_v17, %v913_v15  ;;  %951 = vmatmul.bf16.gmra.mxu0 %v1626_v10  ;;  %v1982_v10 = vld [vmem:[%s3118_s0 + $0x19c] sm:$0xf]  ;;  %v1650_v17 = vor.u32 %v1983_v4, %v1649_v12  ;;  %v1993_v12 = vld [vmem:[%s3118_s0 + $0x1f0] sm:$0xf0]  ;;  %v1008_v4 = vadd.f32 %v2363_v58, %v2468_v1  ;;  %v1673_v1 = vld [vmem:[%s3118_s0 + $0x1c8] sm:$0xf] }
 0x112   :  { %1200 = vmatmul.bf16.gmra.mxu3 %v1822_v13  ;;  %1120 = vmatmul.bf16.gmra.mxu1 %v1630_v14  ;;  %v1000_v13 = vadd.f32 %v2363_v58, %v2419_v26  ;;  %v1654_v21 = vor.u32 %v1982_v10, %v1651_v11 }
 0x113   :  { %v1251_v19 = vadd.f32 %v1250_v41, %v1082_v18 }
 0x115   :  { %1389 = vst [vmem:[%s3120_s3 + $0x70] sm:$0xff] %v1251_v19  ;;  %v2653_v22 = vpop.f32.mrf.mxu3  ;;  %v1257_v24 = vpop.f32.mrf.mxu2 }
 0x116   :  { %v914_v25 = vpop.f32.mrf.mxu0 }
 0x117   :  { %v915_v28 = vadd.f32 %v2363_v58, %v914_v25  ;;  %v1083_v30 = vpop.f32.mrf.mxu1 }
 0x119   :  { %v1084_v31 = vadd.f32 %v1083_v30, %v915_v28  ;;  %v1681_v28 = vld [vmem:[%s3118_s0 + $0x1d0] sm:$0xf]  ;;  %v1990_v30 = vld [vmem:[%s3118_s0 + $0x1d8] sm:$0xf0] }
 0x11a   :  { %1916 = vmatmul.msk.bf16.gmra.mxu2 %vm771_vm0, %v1658_v27  ;;  %v1682_v36 = vor.u32 %v1990_v30, %v1681_v28 }
 0x11b   :  { %v1253_v35 = vadd.f32 %v1252_v55, %v1084_v31  ;;  %v1987_v55 = vld [vmem:[%s3118_s0 + $0x1c0] sm:$0xf0]  ;;  %v1003_v31 = vadd.f32 %v2363_v58, %v2431_v38  ;;  %v1661_v38 = vld [vmem:[%s3118_s0 + $0x1b0] sm:$0xf] }
 0x11c   :  { %v1670_v63 = vor.u32 %v1987_v55, %v1669_v53 }
 0x11d   :  { %1390 = vst [vmem:[%s3120_s3 + $0x78] sm:$0xff] %v1253_v35  ;;  %v2678_v41 = vpop.f32.mrf.mxu3  ;;  %v1260_v42 = vpop.f32.mrf.mxu2 }
 0x11e   :  { %v917_v45 = vpop.f32.mrf.mxu0 }
 0x11f   :  { %v918_v48 = vadd.f32 %v2363_v58, %v917_v45  ;;  %v1086_v49 = vpop.f32.mrf.mxu1  ;;  %v1789_v45 = vld [vmem:[%s3118_s0 + $0x2a8] sm:$0xf] }
 0x121   :  { %v1087_v50 = vadd.f32 %v1086_v49, %v918_v48  ;;  %956 = vmatmul.bf16.gmra.mxu0 %v1638_v43  ;;  %v1986_v43 = vld [vmem:[%s3118_s0 + $0x1b8] sm:$0xf0]  ;;  %v1985_v48 = vld [vmem:[%s3118_s0 + $0x1b4] sm:$0xf]  ;;  %v1663_v49 = vld [vmem:[%s3118_s0 + $0x1bc] sm:$0xf0] }
 0x122   :  { %1925 = vmatmul.msk.bf16.vlgmr.msra.gmra.mxu3 %vm771_vm0, %v1766_v46  ;;  %1125 = vmatmul.bf16.gmra.mxu1 %v1642_v47  ;;  %v2017_v47 = vld [vmem:[%s3118_s0 + $0x2b0] sm:$0xf0]  ;;  %v1662_v55 = vor.u32 %v1986_v43, %v1661_v38  ;;  %v1996_v38 = vld [vmem:[%s3118_s0 + $0x208] sm:$0xf0]  ;;  %v1013_v43 = vadd.f32 %v2363_v58, %v2505_v29  ;;  %v1685_v29 = vld [vmem:[%s3118_s0 + $0x1e0] sm:$0xf] }
 0x123   :  { %v1256_v51 = vadd.f32 %v1255_v8, %v1087_v50  ;;  %v2014_v8 = vld [vmem:[%s3118_s0 + $0x298] sm:$0xf0]  ;;  %v1005_v50 = vadd.f32 %v2363_v58, %v2456_v52 }
 0x124   :  { %v1778_v20 = vor.u32 %v2014_v8, %v1777_v5 }
 0x125   :  { %1391 = vst [vmem:[%s3120_s3 + $0x80] sm:$0xff] %v1256_v51  ;;  %v1166_v59 = vpop.f32.mrf.mxu3  ;;  %v1262_v60 = vpop.f32.mrf.mxu2 }
 0x126   :  { %v2693_v61 = vadd.f32 %v1166_v59, %v998_v56  ;;  %v919_v62 = vpop.f32.mrf.mxu0 }
 0x127   :  { %v920_v0 = vadd.f32 %v2363_v58, %v919_v62  ;;  %v1088_v2 = vpop.f32.mrf.mxu1  ;;  %v1666_v62 = vor.u32 %v1985_v48, %v1663_v49 }
 0x129   :  { %v1089_v3 = vadd.f32 %v1088_v2, %v920_v0 }
 0x12a   :  { %1917 = vmatmul.msk.bf16.gmra.mxu2 %vm771_vm0, %v1670_v63 }
 0x12b   :  { %v1258_v6 = vadd.f32 %v1257_v24, %v1089_v3  ;;  %v1693_v3 = vld [vmem:[%s3118_s0 + $0x1e8] sm:$0xf] }
 0x12c   :  { %v1694_v11 = vor.u32 %v1993_v12, %v1693_v3 }
 0x12d   :  { %1392 = vst [vmem:[%s3120_s3 + $0x88] sm:$0xff] %v1258_v6  ;;  %v1168_v14 = vpop.f32.mrf.mxu3  ;;  %v1265_v15 = vpop.f32.mrf.mxu2 }
 0x12e   :  { %v2720_v18 = vadd.f32 %v1168_v14, %v1000_v13  ;;  %v922_v19 = vpop.f32.mrf.mxu0 }
 0x12f   :  { %v923_v24 = vadd.f32 %v2363_v58, %v922_v19  ;;  %v1091_v25 = vpop.f32.mrf.mxu1  ;;  %v1801_v19 = vld [vmem:[%s3118_s0 + $0x2c0] sm:$0xf] }
 0x131   :  { %v1092_v27 = vadd.f32 %v1091_v25, %v923_v24  ;;  %961 = vmatmul.bf16.gmra.mxu0 %v1650_v17  ;;  %v1989_v17 = vld [vmem:[%s3118_s0 + $0x1d0] sm:$0xf0]  ;;  %v1988_v24 = vld [vmem:[%s3118_s0 + $0x1cc] sm:$0xf]  ;;  %v1675_v25 = vld [vmem:[%s3118_s0 + $0x1d4] sm:$0xf0] }
 0x132   :  { %1926 = vmatmul.msk.bf16.gmra.mxu3 %vm771_vm0, %v1778_v20  ;;  %1130 = vmatmul.bf16.gmra.mxu1 %v1654_v21  ;;  %v2020_v21 = vld [vmem:[%s3118_s0 + $0x2c8] sm:$0xf0]  ;;  %v1674_v30 = vor.u32 %v1989_v17, %v1673_v1  ;;  %v1999_v1 = vld [vmem:[%s3118_s0 + $0x220] sm:$0xf0]  ;;  %v1018_v17 = vadd.f32 %v2363_v58, %v2542_v57  ;;  %v1697_v57 = vld [vmem:[%s3118_s0 + $0x1f8] sm:$0xf] }
 0x133   :  { %v1261_v26 = vadd.f32 %v1260_v42, %v1092_v27  ;;  %v1010_v27 = vadd.f32 %v2363_v58, %v2493_v16 }
 0x135   :  { %1393 = vst [vmem:[%s3120_s3 + $0x90] sm:$0xff] %v1261_v26  ;;  %v1171_v32 = vpop.f32.mrf.mxu3  ;;  %v1267_v33 = vpop.f32.mrf.mxu2 }
 0x136   :  { %v2735_v34 = vadd.f32 %v1171_v32, %v1003_v31  ;;  %v924_v35 = vpop.f32.mrf.mxu0 }
 0x137   :  { %v925_v37 = vadd.f32 %v2363_v58, %v924_v35  ;;  %v1093_v39 = vpop.f32.mrf.mxu1  ;;  %v1678_v35 = vor.u32 %v1988_v24, %v1675_v25 }
 0x139   :  { %v1094_v42 = vadd.f32 %v1093_v39, %v925_v37 }
 0x13a   :  { %1918 = vmatmul.msk.bf16.gmra.mxu2 %vm771_vm0, %v1682_v36 }
 0x13b   :  { %v1263_v46 = vadd.f32 %v1262_v60, %v1094_v42  ;;  %v1790_v60 = vor.u32 %v2017_v47, %v1789_v45  ;;  %v1705_v42 = vld [vmem:[%s3118_s0 + $0x200] sm:$0xf] }
 0x13c   :  { %v1706_v49 = vor.u32 %v1996_v38, %v1705_v42 }
 0x13d   :  { %1394 = vst [vmem:[%s3120_s3 + $0x98] sm:$0xff] %v1263_v46  ;;  %v1173_v51 = vpop.f32.mrf.mxu3  ;;  %v1270_v53 = vpop.f32.mrf.mxu2 }
 0x13e   :  { %v2762_v56 = vadd.f32 %v1173_v51, %v1005_v50  ;;  %v927_v59 = vpop.f32.mrf.mxu0 }
 0x13f   :  { %v928_v63 = vadd.f32 %v2363_v58, %v927_v59  ;;  %v1096_v0 = vpop.f32.mrf.mxu1  ;;  %v1813_v59 = vld [vmem:[%s3118_s0 + $0x2d8] sm:$0xf] }
 0x141   :  { %v1097_v2 = vadd.f32 %v1096_v0, %v928_v63  ;;  %966 = vmatmul.bf16.gmra.mxu0 %v1662_v55  ;;  %v1992_v55 = vld [vmem:[%s3118_s0 + $0x1e8] sm:$0xf0]  ;;  %v1991_v63 = vld [vmem:[%s3118_s0 + $0x1e4] sm:$0xf]  ;;  %v1687_v0 = vld [vmem:[%s3118_s0 + $0x1ec] sm:$0xf0] }
 0x142   :  { %1927 = vmatmul.msk.bf16.gmra.mxu3 %vm771_vm0, %v1790_v60  ;;  %1135 = vmatmul.bf16.gmra.mxu1 %v1666_v62  ;;  %v2023_v62 = vld [vmem:[%s3118_s0 + $0x2e0] sm:$0xf0]  ;;  %v1686_v12 = vor.u32 %v1992_v55, %v1685_v29  ;;  %v2002_v29 = vld [vmem:[%s3118_s0 + $0x238] sm:$0xf0]  ;;  %v1023_v55 = vadd.f32 %v2363_v58, %v2579_v23  ;;  %v1709_v23 = vld [vmem:[%s3118_s0 + $0x210] sm:$0xf] }
 0x143   :  { %v1266_v52 = vadd.f32 %v1265_v15, %v1097_v2  ;;  %v1015_v2 = vadd.f32 %v2363_v58, %v2530_v44 }
 0x145   :  { %1395 = vst [vmem:[%s3120_s3 + $0xa0] sm:$0xff] %v1266_v52  ;;  %v1176_v5 = vpop.f32.mrf.mxu3  ;;  %v1272_v6 = vpop.f32.mrf.mxu2 }
 0x146   :  { %v2777_v8 = vadd.f32 %v1176_v5, %v1008_v4  ;;  %v929_v10 = vpop.f32.mrf.mxu0 }
 0x147   :  { %v930_v13 = vadd.f32 %v2363_v58, %v929_v10  ;;  %v1098_v14 = vpop.f32.mrf.mxu1  ;;  %v1690_v10 = vor.u32 %v1991_v63, %v1687_v0 }
 0x149   :  { %v1099_v15 = vadd.f32 %v1098_v14, %v930_v13 }
 0x14a   :  { %1919 = vmatmul.msk.bf16.gmra.mxu2 %vm771_vm0, %v1694_v11 }
 0x14b   :  { %v1268_v20 = vadd.f32 %v1267_v33, %v1099_v15  ;;  %v1802_v33 = vor.u32 %v2020_v21, %v1801_v19  ;;  %v1717_v15 = vld [vmem:[%s3118_s0 + $0x218] sm:$0xf] }
 0x14c   :  { %v1718_v25 = vor.u32 %v1999_v1, %v1717_v15 }
 0x14d   :  { %1396 = vst [vmem:[%s3120_s3 + $0xa8] sm:$0xff] %v1268_v20  ;;  %v1178_v26 = vpop.f32.mrf.mxu3  ;;  %v1275_v28 = vpop.f32.mrf.mxu2 }
 0x14e   :  { %v2804_v31 = vadd.f32 %v1178_v26, %v1010_v27  ;;  %v932_v32 = vpop.f32.mrf.mxu0 }
 0x14f   :  { %v933_v36 = vadd.f32 %v2363_v58, %v932_v32  ;;  %v1101_v37 = vpop.f32.mrf.mxu1  ;;  %v1825_v32 = vld [vmem:[%s3118_s0 + $0x2f0] sm:$0xf] }
 0x151   :  { %v1102_v39 = vadd.f32 %v1101_v37, %v933_v36  ;;  %971 = vmatmul.bf16.gmra.mxu0 %v1674_v30  ;;  %v1995_v30 = vld [vmem:[%s3118_s0 + $0x200] sm:$0xf0]  ;;  %v1994_v36 = vld [vmem:[%s3118_s0 + $0x1fc] sm:$0xf]  ;;  %v1699_v37 = vld [vmem:[%s3118_s0 + $0x204] sm:$0xf0] }
 0x152   :  { %1928 = vmatmul.msk.bf16.gmra.mxu3 %vm771_vm0, %v1802_v33  ;;  %1140 = vmatmul.bf16.gmra.mxu1 %v1678_v35  ;;  %v2026_v35 = vld [vmem:[%s3118_s0 + $0x2f8] sm:$0xf0]  ;;  %v1698_v38 = vor.u32 %v1995_v30, %v1697_v57 }
 0x153   :  { %v1271_v16 = vadd.f32 %v1270_v53, %v1102_v39  ;;  %v1020_v39 = vadd.f32 %v2363_v58, %v2567_v9 }
 0x155   :  { %1397 = vst [vmem:[%s3120_s3 + $0xb0] sm:$0xff] %v1271_v16  ;;  %v1181_v45 = vpop.f32.mrf.mxu3  ;;  %v1277_v46 = vpop.f32.mrf.mxu2 }
 0x156   :  { %v2819_v47 = vadd.f32 %v1181_v45, %v1013_v43  ;;  %v934_v48 = vpop.f32.mrf.mxu0 }
 0x157   :  { %v935_v50 = vadd.f32 %v2363_v58, %v934_v48  ;;  %v1103_v51 = vpop.f32.mrf.mxu1  ;;  %v1702_v48 = vor.u32 %v1994_v36, %v1699_v37 }
 0x159   :  { %v1104_v53 = vadd.f32 %v1103_v51, %v935_v50 }
 0x15a   :  { %1920 = vmatmul.msk.bf16.gmra.mxu2 %vm771_vm0, %v1706_v49 }
 0x15b   :  { %v1273_v60 = vadd.f32 %v1272_v6, %v1104_v53  ;;  %v1814_v6 = vor.u32 %v2023_v62, %v1813_v59  ;;  %v1729_v53 = vld [vmem:[%s3118_s0 + $0x230] sm:$0xf] }
 0x15c   :  { %v1730_v0 = vor.u32 %v2002_v29, %v1729_v53  ;;  %v2964_v53 = vld [vmem:[%s3119_s2] ss:$0 sm:$0xff] }
 0x15d   :  { %1398 = vst [vmem:[%s3120_s3 + $0xb8] sm:$0xff] %v1273_v60  ;;  %v1183_v52 = vpop.f32.mrf.mxu3  ;;  %v1280_v3 = vpop.f32.mrf.mxu2 }
 0x15e   :  { %v2846_v4 = vadd.f32 %v1183_v52, %v1015_v2  ;;  %v937_v5 = vpop.f32.mrf.mxu0 }
 0x15f   :  { %v938_v11 = vadd.f32 %v2363_v58, %v937_v5  ;;  %v1106_v13 = vpop.f32.mrf.mxu1 }
 0x161   :  { %v1107_v14 = vadd.f32 %v1106_v13, %v938_v11  ;;  %976 = vmatmul.bf16.gmra.mxu0 %v1686_v12  ;;  %v1998_v12 = vld [vmem:[%s3118_s0 + $0x218] sm:$0xf0]  ;;  %v1025_v11 = vadd.f32 %v2363_v58, %v2604_v40  ;;  %v1741_v40 = vld [vmem:[%s3118_s0 + $0x248] sm:$0xf] }
 0x162   :  { %1929 = vmatmul.msk.bf16.gmra.mxu3 %vm771_vm0, %v1814_v6  ;;  %1145 = vmatmul.bf16.gmra.mxu1 %v1690_v10  ;;  %v1997_v6 = vld [vmem:[%s3118_s0 + $0x214] sm:$0xf]  ;;  %v1711_v10 = vld [vmem:[%s3118_s0 + $0x21c] sm:$0xf0] }
 0x163   :  { %v1276_v44 = vadd.f32 %v1275_v28, %v1107_v14 }
 0x165   :  { %1399 = vst [vmem:[%s3120_s3 + $0xc0] sm:$0xff] %v1276_v44  ;;  %v1186_v19 = vpop.f32.mrf.mxu3  ;;  %v1282_v20 = vpop.f32.mrf.mxu2  ;;  %v1710_v44 = vor.u32 %v1998_v12, %v1709_v23 }
 0x166   :  { %v2861_v21 = vadd.f32 %v1186_v19, %v1018_v17  ;;  %v939_v24 = vpop.f32.mrf.mxu0  ;;  %v1714_v17 = vor.u32 %v1997_v6, %v1711_v10 }
 0x167   :  { %v940_v27 = vadd.f32 %v2363_v58, %v939_v24  ;;  %v1108_v26 = vpop.f32.mrf.mxu1 }
 0x169   :  { %v1109_v28 = vadd.f32 %v1108_v26, %v940_v27  ;;  %v2005_v27 = vld [vmem:[%s3118_s0 + $0x250] sm:$0xf0]  ;;  %v1028_v26 = vadd.f32 %v2363_v58, %v2616_v54  ;;  %v1721_v54 = vld [vmem:[%s3118_s0 + $0x228] sm:$0xf] }
 0x16a   :  { %1921 = vmatmul.msk.bf16.gmra.mxu2 %vm771_vm0, %v1718_v25 }
 0x16b   :  { %v1278_v33 = vadd.f32 %v1277_v46, %v1109_v28  ;;  %v1826_v46 = vor.u32 %v2026_v35, %v1825_v32 }
 0x16d   :  { %1400 = vst [vmem:[%s3120_s3 + $0xc8] sm:$0xff] %v1278_v33  ;;  %v1188_v16 = vpop.f32.mrf.mxu3  ;;  %v1285_v42 = vpop.f32.mrf.mxu2  ;;  %v1742_v33 = vor.u32 %v2005_v27, %v1741_v40 }
 0x16e   :  { %v2888_v43 = vadd.f32 %v1188_v16, %v1020_v39  ;;  %v942_v45 = vpop.f32.mrf.mxu0  ;;  %v2001_v39 = vld [vmem:[%s3118_s0 + $0x230] sm:$0xf0] }
 0x16f   :  { %v943_v49 = vadd.f32 %v2363_v58, %v942_v45  ;;  %v1111_v50 = vpop.f32.mrf.mxu1  ;;  %v1030_v45 = vadd.f32 %v2363_v58, %v2641_v7 }
 0x171   :  { %v1112_v51 = vadd.f32 %v1111_v50, %v943_v49  ;;  %981 = vmatmul.bf16.gmra.mxu0 %v1698_v38  ;;  %v1723_v38 = vld [vmem:[%s3118_s0 + $0x234] sm:$0xf0]  ;;  %v1722_v49 = vor.u32 %v2001_v39, %v1721_v54 }
 0x172   :  { %1930 = vmatmul.msk.bf16.gmra.mxu3 %vm771_vm0, %v1826_v46  ;;  %1150 = vmatmul.bf16.gmra.mxu1 %v1702_v48 }
 0x173   :  { %v1281_v9 = vadd.f32 %v1280_v3, %v1112_v51 }
 0x175   :  { %1401 = vst [vmem:[%s3120_s3 + $0xd0] sm:$0xff] %v1281_v9  ;;  %v1191_v59 = vpop.f32.mrf.mxu3  ;;  %v1287_v60 = vpop.f32.mrf.mxu2 }
 0x176   :  { %v2903_v62 = vadd.f32 %v1191_v59, %v1023_v55  ;;  %v944_v63 = vpop.f32.mrf.mxu0  ;;  %v1753_v59 = vld [vmem:[%s3118_s0 + $0x260] sm:$0xf] }
 0x177   :  { %v945_v2 = vadd.f32 %v2363_v58, %v944_v63  ;;  %v1113_v52 = vpop.f32.mrf.mxu1  ;;  %v1033_v63 = vadd.f32 %v2964_v53, %v2653_v22  ;;  %v1035_v22 = vadd.f32 %v2964_v53, %v2678_v41 }
 0x179   :  { %v1114_v3 = vadd.f32 %v1113_v52, %v945_v2 }
 0x17a   :  { %1922 = vmatmul.msk.bf16.gmra.mxu2 %vm771_vm0, %v1730_v0 }
 0x17b   :  { %v1283_v5 = vadd.f32 %v1282_v20, %v1114_v3 }
 0x17d   :  { %1402 = vst [vmem:[%s3120_s3 + $0xd8] sm:$0xff] %v1283_v5  ;;  %v1193_v13 = vpop.f32.mrf.mxu3  ;;  %v1290_v14 = vpop.f32.mrf.mxu2 }
 0x17e   :  { %v2924_v15 = vadd.f32 %v1193_v13, %v1025_v11  ;;  %v947_v1 = vpop.f32.mrf.mxu0 }
 0x17f   :  { %v948_v19 = vadd.f32 %v2363_v58, %v947_v1  ;;  %v1116_v20 = vpop.f32.mrf.mxu1 }
 0x181   :  { %v1117_v24 = vadd.f32 %v1116_v20, %v948_v19  ;;  %986 = vmatmul.bf16.gmra.mxu0 %v1710_v44 }
 0x182   :  { %1155 = vmatmul.bf16.gmra.mxu1 %v1714_v17 }
 0x183   :  { %v1286_v25 = vadd.f32 %v1285_v42, %v1117_v24  ;;  %v2000_v42 = vld [vmem:[%s3118_s0 + $0x22c] sm:$0xf] }
 0x184   :  { %v1726_v9 = vor.u32 %v2000_v42, %v1723_v38 }
 0x185   :  { %1403 = vst [vmem:[%s3120_s3 + $0xe0] sm:$0xff] %v1286_v25  ;;  %v1196_v28 = vpop.f32.mrf.mxu3  ;;  %v1292_v57 = vpop.f32.mrf.mxu2 }
 0x186   :  { %v2938_v30 = vadd.f32 %v1196_v28, %v1028_v26  ;;  %v949_v32 = vpop.f32.mrf.mxu0 }
 0x187   :  { %v950_v35 = vadd.f32 %v2363_v58, %v949_v32  ;;  %v1118_v36 = vpop.f32.mrf.mxu1 }
 0x189   :  { %v1119_v37 = vadd.f32 %v1118_v36, %v950_v35 }
 0x18a   :  { %1923 = vmatmul.msk.bf16.gmra.mxu2 %vm771_vm0, %v1742_v33 }
 0x18b   :  { %v1288_v16 = vadd.f32 %v1287_v60, %v1119_v37  ;;  %v2008_v60 = vld [vmem:[%s3118_s0 + $0x268] sm:$0xf0] }
 0x18c   :  { %v1754_v23 = vor.u32 %v2008_v60, %v1753_v59 }
 0x18d   :  { %1404 = vst [vmem:[%s3120_s3 + $0xe8] sm:$0xff] %v1288_v16  ;;  %v1198_v46 = vpop.f32.mrf.mxu3  ;;  %v1295_v48 = vpop.f32.mrf.mxu2 }
 0x18e   :  { %v2959_v50 = vadd.f32 %v1198_v46, %v1030_v45  ;;  %v952_v51 = vpop.f32.mrf.mxu0 }
 0x18f   :  { %v953_v29 = vadd.f32 %v2964_v53, %v952_v51  ;;  %v1121_v55 = vpop.f32.mrf.mxu1 }
 0x191   :  { %v1122_v58 = vadd.f32 %v1121_v55, %v953_v29  ;;  %991 = vmatmul.bf16.gmra.mxu0 %v1722_v49 }
 0x192   :  { %1160 = vmatmul.bf16.gmra.mxu1 %v1726_v9 }
 0x193   :  { %v1291_v7 = vadd.f32 %v1290_v14, %v1122_v58 }
 0x195   :  { %1405 = vst [vmem:[%s3120_s3 + $0xf0] sm:$0xff] %v1291_v7  ;;  %v1201_v0 = vpop.f32.mrf.mxu3  ;;  %v1297_v2 = vpop.f32.mrf.mxu2 }
 0x196   :  { %v2978_v52 = vadd.f32 %v1201_v0, %v1033_v63  ;;  %v954_v3 = vpop.f32.mrf.mxu0 }
 0x197   :  { %v955_v12 = vadd.f32 %v2964_v53, %v954_v3  ;;  %v1123_v5 = vpop.f32.mrf.mxu1 }
 0x199   :  { %v1124_v6 = vadd.f32 %v1123_v5, %v955_v12 }
 0x19a   :  { %1924 = vmatmul.msk.bf16.gmra.mxu2 %vm771_vm0, %v1754_v23 }
 0x19b   :  { %v1293_v10 = vadd.f32 %v1292_v57, %v1124_v6 }
 0x19d   :  { %1406 = vst [vmem:[%s3120_s3 + $0xf8] sm:$0xff] %v1293_v10  ;;  %v1203_v11 = vpop.f32.mrf.mxu3  ;;  %v1300_v13 = vpop.f32.mrf.mxu2 }
 0x19e   :  { %v2987_v14 = vadd.f32 %v1203_v11, %v1035_v22  ;;  %v957_v44 = vpop.f32.mrf.mxu0 }
 0x19f   :  { %v958_v1 = vadd.f32 %v2964_v53, %v957_v44  ;;  %v1126_v17 = vpop.f32.mrf.mxu1 }
 0x1a1   :  { %v1127_v19 = vadd.f32 %v1126_v17, %v958_v1 }
 0x1a3   :  { %v1296_v20 = vadd.f32 %v1295_v48, %v1127_v19 }
 0x1a5   :  { %1407 = vst [vmem:[%s3120_s3 + $0x100] sm:$0xff] %v1296_v20  ;;  %v1302_v24 = vpop.f32.mrf.mxu2  ;;  %v1345_v41 = vpop.f32.mrf.mxu3 }
 0x1a6   :  { %v1346_v25 = vadd.f32 %v1345_v41, %v2777_v8  ;;  %v959_v40 = vpop.f32.mrf.mxu0 }
 0x1a7   :  { %v960_v27 = vadd.f32 %v2964_v53, %v959_v40  ;;  %v1128_v26 = vpop.f32.mrf.mxu1 }
 0x1a8   :  { %1427 = vst [vmem:[%s3120_s3 + $0x1a0] sm:$0xff] %v1346_v25 }
 0x1a9   :  { %v1129_v28 = vadd.f32 %v1128_v26, %v960_v27 }
 0x1ab   :  { %v1298_v57 = vadd.f32 %v1297_v2, %v1129_v28 }
 0x1ad   :  { %1408 = vst [vmem:[%s3120_s3 + $0x108] sm:$0xff] %v1298_v57  ;;  %v1305_v32 = vpop.f32.mrf.mxu2  ;;  %v1347_v33 = vpop.f32.mrf.mxu3 }
 0x1ae   :  { %v1348_v35 = vadd.f32 %v1347_v33, %v2804_v31  ;;  %v962_v36 = vpop.f32.mrf.mxu0 }
 0x1af   :  { %v963_v8 = vadd.f32 %v2964_v53, %v962_v36  ;;  %v1131_v37 = vpop.f32.mrf.mxu1 }
 0x1b0   :  { %1428 = vst [vmem:[%s3120_s3 + $0x1a8] sm:$0xff] %v1348_v35 }
 0x1b1   :  { %v1132_v54 = vadd.f32 %v1131_v37, %v963_v8 }
 0x1b3   :  { %v1301_v39 = vadd.f32 %v1300_v13, %v1132_v54 }
 0x1b5   :  { %1409 = vst [vmem:[%s3120_s3 + $0x110] sm:$0xff] %v1301_v39  ;;  %v1307_v16 = vpop.f32.mrf.mxu2  ;;  %v1350_v42 = vpop.f32.mrf.mxu3 }
 0x1b6   :  { %v1351_v38 = vadd.f32 %v1350_v42, %v2819_v47  ;;  %v964_v45 = vpop.f32.mrf.mxu0 }
 0x1b7   :  { %v965_v31 = vadd.f32 %v2964_v53, %v964_v45  ;;  %v1133_v46 = vpop.f32.mrf.mxu1 }
 0x1b8   :  { %1429 = vst [vmem:[%s3120_s3 + $0x1b0] sm:$0xff] %v1351_v38 }
 0x1b9   :  { %v1134_v48 = vadd.f32 %v1133_v46, %v965_v31 }
 0x1bb   :  { %v1303_v49 = vadd.f32 %v1302_v24, %v1134_v48 }
 0x1bd   :  { %1410 = vst [vmem:[%s3120_s3 + $0x118] sm:$0xff] %v1303_v49  ;;  %v1310_v51 = vpop.f32.mrf.mxu2  ;;  %v1352_v9 = vpop.f32.mrf.mxu3 }
 0x1be   :  { %v1353_v29 = vadd.f32 %v1352_v9, %v2846_v4  ;;  %v967_v55 = vpop.f32.mrf.mxu0 }
 0x1bf   :  { %v968_v47 = vadd.f32 %v2964_v53, %v967_v55  ;;  %v1136_v58 = vpop.f32.mrf.mxu1 }
 0x1c0   :  { %1430 = vst [vmem:[%s3120_s3 + $0x1b8] sm:$0xff] %v1353_v29 }
 0x1c1   :  { %v1137_v7 = vadd.f32 %v1136_v58, %v968_v47 }
 0x1c3   :  { %v1306_v59 = vadd.f32 %v1305_v32, %v1137_v7 }
 0x1c5   :  { %1411 = vst [vmem:[%s3120_s3 + $0x120] sm:$0xff] %v1306_v59  ;;  %v1312_v60 = vpop.f32.mrf.mxu2  ;;  %v1355_v63 = vpop.f32.mrf.mxu3 }
 0x1c6   :  { %v1356_v0 = vadd.f32 %v1355_v63, %v2861_v21  ;;  %v969_v2 = vpop.f32.mrf.mxu0 }
 0x1c7   :  { %v970_v4 = vadd.f32 %v2964_v53, %v969_v2  ;;  %v1138_v3 = vpop.f32.mrf.mxu1 }
 0x1c8   :  { %1431 = vst [vmem:[%s3120_s3 + $0x1c0] sm:$0xff] %v1356_v0 }
 0x1c9   :  { %v1139_v23 = vadd.f32 %v1138_v3, %v970_v4 }
 0x1cb   :  { %v1308_v12 = vadd.f32 %v1307_v16, %v1139_v23 }
 0x1cd   :  { %1412 = vst [vmem:[%s3120_s3 + $0x128] sm:$0xff] %v1308_v12  ;;  %v1315_v5 = vpop.f32.mrf.mxu2  ;;  %v1357_v6 = vpop.f32.mrf.mxu3 }
 0x1ce   :  { %v1358_v10 = vadd.f32 %v1357_v6, %v2888_v43  ;;  %v972_v22 = vpop.f32.mrf.mxu0 }
 0x1cf   :  { %v973_v21 = vadd.f32 %v2964_v53, %v972_v22  ;;  %v1141_v11 = vpop.f32.mrf.mxu1 }
 0x1d0   :  { %1432 = vst [vmem:[%s3120_s3 + $0x1c8] sm:$0xff] %v1358_v10 }
 0x1d1   :  { %v1142_v13 = vadd.f32 %v1141_v11, %v973_v21 }
 0x1d3   :  { %v1311_v44 = vadd.f32 %v1310_v51, %v1142_v13 }
 0x1d5   :  { %1413 = vst [vmem:[%s3120_s3 + $0x130] sm:$0xff] %v1311_v44  ;;  %v1317_v1 = vpop.f32.mrf.mxu2  ;;  %v1360_v17 = vpop.f32.mrf.mxu3 }
 0x1d6   :  { %v1361_v19 = vadd.f32 %v1360_v17, %v2903_v62  ;;  %v974_v20 = vpop.f32.mrf.mxu0 }
 0x1d7   :  { %v975_v43 = vadd.f32 %v2964_v53, %v974_v20  ;;  %v1143_v24 = vpop.f32.mrf.mxu1 }
 0x1d8   :  { %1433 = vst [vmem:[%s3120_s3 + $0x1d0] sm:$0xff] %v1361_v19 }
 0x1d9   :  { %v1144_v41 = vadd.f32 %v1143_v24, %v975_v43 }
 0x1db   :  { %v1313_v25 = vadd.f32 %v1312_v60, %v1144_v41 }
 0x1dd   :  { %1414 = vst [vmem:[%s3120_s3 + $0x138] sm:$0xff] %v1313_v25  ;;  %v1320_v40 = vpop.f32.mrf.mxu2  ;;  %v1362_v27 = vpop.f32.mrf.mxu3 }
 0x1de   :  { %v1363_v26 = vadd.f32 %v1362_v27, %v2924_v15  ;;  %v977_v28 = vpop.f32.mrf.mxu0 }
 0x1df   :  { %v978_v62 = vadd.f32 %v2964_v53, %v977_v28  ;;  %v1146_v57 = vpop.f32.mrf.mxu1 }
 0x1e0   :  { %1434 = vst [vmem:[%s3120_s3 + $0x1d8] sm:$0xff] %v1363_v26 }
 0x1e1   :  { %v1147_v32 = vadd.f32 %v1146_v57, %v978_v62 }
 0x1e3   :  { %v1316_v33 = vadd.f32 %v1315_v5, %v1147_v32 }
 0x1e5   :  { %1415 = vst [vmem:[%s3120_s3 + $0x140] sm:$0xff] %v1316_v33  ;;  %v1322_v35 = vpop.f32.mrf.mxu2  ;;  %v1365_v36 = vpop.f32.mrf.mxu3 }
 0x1e6   :  { %v1366_v8 = vadd.f32 %v1365_v36, %v2938_v30  ;;  %v979_v37 = vpop.f32.mrf.mxu0 }
 0x1e7   :  { %v980_v15 = vadd.f32 %v2964_v53, %v979_v37  ;;  %v1148_v54 = vpop.f32.mrf.mxu1 }
 0x1e8   :  { %1435 = vst [vmem:[%s3120_s3 + $0x1e0] sm:$0xff] %v1366_v8 }
 0x1e9   :  { %v1149_v39 = vadd.f32 %v1148_v54, %v980_v15 }
 0x1eb   :  { %v1318_v16 = vadd.f32 %v1317_v1, %v1149_v39 }
 0x1ed   :  { %1416 = vst [vmem:[%s3120_s3 + $0x148] sm:$0xff] %v1318_v16  ;;  %v1325_v42 = vpop.f32.mrf.mxu2  ;;  %v1367_v38 = vpop.f32.mrf.mxu3 }
 0x1ee   :  { %v1368_v45 = vadd.f32 %v1367_v38, %v2959_v50  ;;  %v982_v31 = vpop.f32.mrf.mxu0 }
 0x1ef   :  { %v983_v30 = vadd.f32 %v2964_v53, %v982_v31  ;;  %v1151_v46 = vpop.f32.mrf.mxu1 }
 0x1f0   :  { %1436 = vst [vmem:[%s3120_s3 + $0x1e8] sm:$0xff] %v1368_v45 }
 0x1f1   :  { %v1152_v48 = vadd.f32 %v1151_v46, %v983_v30 }
 0x1f3   :  { %v1321_v49 = vadd.f32 %v1320_v40, %v1152_v48 }
 0x1f5   :  { %1417 = vst [vmem:[%s3120_s3 + $0x150] sm:$0xff] %v1321_v49  ;;  %v1327_v51 = vpop.f32.mrf.mxu2  ;;  %v1370_v9 = vpop.f32.mrf.mxu3 }
 0x1f6   :  { %v1371_v29 = vadd.f32 %v1370_v9, %v2978_v52  ;;  %v984_v55 = vpop.f32.mrf.mxu0 }
 0x1f7   :  { %v985_v50 = vadd.f32 %v2964_v53, %v984_v55  ;;  %v1153_v47 = vpop.f32.mrf.mxu1 }
 0x1f8   :  { %1437 = vst [vmem:[%s3120_s3 + $0x1f0] sm:$0xff] %v1371_v29 }
 0x1f9   :  { %v1154_v58 = vadd.f32 %v1153_v47, %v985_v50 }
 0x1fb   :  { %v1323_v7 = vadd.f32 %v1322_v35, %v1154_v58 }
 0x1fd   :  { %1418 = vst [vmem:[%s3120_s3 + $0x158] sm:$0xff] %v1323_v7  ;;  %v1330_v59 = vpop.f32.mrf.mxu2  ;;  %v1372_v60 = vpop.f32.mrf.mxu3 }
 0x1fe   :  { %v1373_v63 = vadd.f32 %v1372_v60, %v2987_v14  ;;  %v987_v0 = vpop.f32.mrf.mxu0 }
 0x1ff   :  { %v988_v52 = vadd.f32 %v2964_v53, %v987_v0  ;;  %v1156_v2 = vpop.f32.mrf.mxu1 }
 0x200   :  { %1438 = vst [vmem:[%s3120_s3 + $0x1f8] sm:$0xff] %v1373_v63 }
 0x201   :  { %v1157_v4 = vadd.f32 %v1156_v2, %v988_v52 }
 0x203   :  { %v1326_v3 = vadd.f32 %v1325_v42, %v1157_v4 }
 0x205   :  { %1419 = vst [vmem:[%s3120_s3 + $0x160] sm:$0xff] %v1326_v3  ;;  %v1332_v23 = vpop.f32.mrf.mxu2 }
 0x206   :  { %v989_v12 = vpop.f32.mrf.mxu0 }
 0x207   :  { %v990_v5 = vadd.f32 %v2964_v53, %v989_v12  ;;  %v1158_v6 = vpop.f32.mrf.mxu1 }
 0x209   :  { %v1159_v14 = vadd.f32 %v1158_v6, %v990_v5 }
 0x20b   :  { %v1328_v10 = vadd.f32 %v1327_v51, %v1159_v14 }
 0x20d   :  { %1420 = vst [vmem:[%s3120_s3 + $0x168] sm:$0xff] %v1328_v10  ;;  %v1335_v22 = vpop.f32.mrf.mxu2 }
 0x20e   :  { %v1336_v21 = vadd.f32 %v1335_v22, %v2693_v61  ;;  %v992_v11 = vpop.f32.mrf.mxu0 }
 0x20f   :  { %v993_v13 = vadd.f32 %v2964_v53, %v992_v11  ;;  %v1161_v44 = vpop.f32.mrf.mxu1 }
 0x210   :  { %1423 = vst [vmem:[%s3120_s3 + $0x180] sm:$0xff] %v1336_v21 }
 0x211   :  { %v1162_v1 = vadd.f32 %v1161_v44, %v993_v13 }
 0x213   :  { %v1331_v17 = vadd.f32 %v1330_v59, %v1162_v1 }
 0x215   :  { %1421 = vst [vmem:[%s3120_s3 + $0x170] sm:$0xff] %v1331_v17  ;;  %v1337_v19 = vpop.f32.mrf.mxu2 }
 0x216   :  { %v1338_v20 = vadd.f32 %v1337_v19, %v2720_v18  ;;  %v994_v43 = vpop.f32.mrf.mxu0 }
 0x217   :  { %v995_v61 = vadd.f32 %v2964_v53, %v994_v43  ;;  %v1163_v24 = vpop.f32.mrf.mxu1 }
 0x218   :  { %1424 = vst [vmem:[%s3120_s3 + $0x188] sm:$0xff] %v1338_v20 }
 0x219   :  { %v1164_v41 = vadd.f32 %v1163_v24, %v995_v61 }
 0x21b   :  { %v1333_v25 = vadd.f32 %v1332_v23, %v1164_v41 }
 0x21d   :  { %1422 = vst [vmem:[%s3120_s3 + $0x178] sm:$0xff] %v1333_v25  ;;  %v1340_v40 = vpop.f32.mrf.mxu2 }
 0x21e   :  { %v1341_v27 = vadd.f32 %v1340_v40, %v2735_v34 }
 0x220   :  { %1425 = vst [vmem:[%s3120_s3 + $0x190] sm:$0xff] %v1341_v27 }
 0x225   :  { %v1342_v18 = vpop.f32.mrf.mxu2 }
 0x226   :  { %v1343_v53 = vadd.f32 %v1342_v18, %v2762_v56 }
 0x228   :  { %1426 = vst [vmem:[%s3120_s3 + $0x198] sm:$0xff] %v1343_v53 }

</bundles_post_ra>
